<compile_context>
chip_gen: v7x
topology: tpu7x:2x2x1
jax: 0.10.0
libtpu: 0.0.40
codegen_flags: <defaults>
</compile_context>

<pallas_src>
import jax
import jax.numpy as jnp
from jax.experimental import pallas as pl
from jax.experimental.pallas import tpu as pltpu


def relu_conv1x1_kernel(x_ref, w_ref, o_ref):
    # x_ref: (1, C_in, H*W) f32   -- one batch slab of activations
    # w_ref: (TCO, C_in)    bf16  -- one tile of C_out rows of the weight
    # o_ref: (1, TCO, H*W)  f32
    x = jnp.maximum(x_ref[0], 0.0).astype(jnp.bfloat16)          # fused ReLU + bf16 (VPU)
    o_ref[0] = jnp.dot(
        w_ref[...], x, preferred_element_type=jnp.float32        # 1x1 conv == matmul (MXU)
    ).astype(o_ref.dtype)


def relu_conv1x1(x_nchw, w_bf16, *, tco=336):
    """ReLU followed by 1x1 conv (no bias), computed as W @ relu(X) in NCHW.

    x_nchw: (N, C_in, H, W) float32
    w_bf16: (C_out, C_in)   bfloat16 (pre-cast, fixed parameter)
    """
    N, C, H, W = x_nchw.shape
    C_out, C_in = w_bf16.shape
    assert C == C_in

    HW = H * W
    # NCHW is already (C_in, H*W) per batch -> pure reshape, no transpose.
    x3 = x_nchw.reshape(N, C_in, HW)

    n_co = pl.cdiv(C_out, tco)

    out3 = pl.pallas_call(
        relu_conv1x1_kernel,
        out_shape=jax.ShapeDtypeStruct((N, C_out, HW), x_nchw.dtype),
        grid=(N, n_co),
        in_specs=[
            # Full activation slab per batch; block index constant over the
            # C_out axis, so it is only DMA'd once per batch.
            pl.BlockSpec((1, C_in, HW), lambda b, j: (b, 0, 0)),
            # One tile of C_out weight rows per grid step -> pipelined DMA.
            pl.BlockSpec((tco, C_in), lambda b, j: (j, 0)),
        ],
        out_specs=pl.BlockSpec((1, tco, HW), lambda b, j: (b, j, 0)),
        compiler_params=pltpu.CompilerParams(
            dimension_semantics=("parallel", "parallel"),
            vmem_limit_bytes=32 << 20,
        ),
    )(x3, w_bf16)

    # (N, C_out, H*W) -> (N, C_out, H, W): contiguous reshape, no transpose.
    return out3.reshape(N, C_out, H, W)


if __name__ == "__main__":
    key = jax.random.PRNGKey(0)
    k_x, k_w = jax.random.split(key)

    # Module fixes C_in = C_out = 1344; spatial 14x14, batch 1 as in the source.
    N, C, H, W = 1, 1344, 14, 14
    x = jax.random.normal(k_x, (N, C, H, W), dtype=jnp.float32)

    # Deterministic Conv2d weight init (kaiming-uniform-like scale), shape (C_out, C_in)
    fan_in = C
    bound = (1.0 / fan_in) ** 0.5
    w = jax.random.uniform(k_w, (C, C), dtype=jnp.float32, minval=-bound, maxval=bound)

    # Hoisted one-time cast of the fixed conv parameter to bf16 (MXU-native).
    w_bf16 = w.astype(jnp.bfloat16)

    out = jax.block_until_ready(relu_conv1x1(x, w_bf16))

    # Reference: ReLU + 1x1 conv, with the same bf16 input rounding the MXU sees.
    x_relu = jnp.maximum(x, 0.0)
    ref = jnp.einsum(
        "nchw,oc->nohw",
        x_relu.astype(jnp.bfloat16).astype(jnp.float32),
        w_bf16.astype(jnp.float32),
    )
    assert out.shape == (N, C, H, W)
    assert jnp.allclose(out, ref, atol=2e-2, rtol=2e-2), float(jnp.max(jnp.abs(out - ref)))

    print("KERNEL_OK")
</pallas_src>

<mosaic_0001>
module attributes {stable_mosaic.version = 11 : i64} {
  func.func @relu_conv1x1_kernel(%arg0: i32, %arg1: i32, %arg2: memref<1x1344x196xf32, #tpu.memory_space<vmem>>, %arg3: memref<336x1344xbf16, #tpu.memory_space<vmem>>, %arg4: memref<1x336x196xf32, #tpu.memory_space<vmem>>) attributes {dimension_semantics = [#tpu.dimension_semantics<parallel>, #tpu.dimension_semantics<parallel>], iteration_bounds = array<i64: 1, 4>, scalar_prefetch = 0 : i64, scratch_operands = 0 : i64, tpu.core_type = #tpu.core_type<tc>, window_params = [{transform_indices = @transform_0, window_bounds = array<i64: 1, 1344, 196>}, {transform_indices = @transform_1, window_bounds = array<i64: 336, 1344>}, {transform_indices = @transform_2, window_bounds = array<i64: 1, 336, 196>}]} {
    %c0 = arith.constant 0 : index
    %c0_0 = arith.constant 0 : index
    %c0_1 = arith.constant 0 : index
    %0 = vector.load %arg2[%c0, %c0_0, %c0_1] : memref<1x1344x196xf32, #tpu.memory_space<vmem>>, vector<1x1344x196xf32>
    %1 = vector.shape_cast %0 : vector<1x1344x196xf32> to vector<1344x196xf32>
    %cst = arith.constant 0.000000e+00 : f32
    %2 = vector.broadcast %cst : f32 to vector<1344x196xf32>
    %3 = arith.maximumf %1, %2 : vector<1344x196xf32>
    %4 = arith.truncf %3 : vector<1344x196xf32> to vector<1344x196xbf16>
    %c0_2 = arith.constant 0 : index
    %c0_3 = arith.constant 0 : index
    %5 = vector.load %arg3[%c0_2, %c0_3] : memref<336x1344xbf16, #tpu.memory_space<vmem>>, vector<336x1344xbf16>
    %cst_4 = arith.constant dense<0.000000e+00> : vector<336x196xf32>
    %6 = tpu.matmul %5, %4, %cst_4 {dimension_numbers = #tpu.dot_dimension_numbers<[1], [0], [0], [1], [0, 0, 1, 1], [], []>} : vector<336x1344xbf16>, vector<1344x196xbf16>, vector<336x196xf32> -> vector<336x196xf32>
    %c0_5 = arith.constant 0 : index
    %c0_6 = arith.constant 0 : index
    %c0_7 = arith.constant 0 : index
    %7 = vector.load %arg4[%c0_5, %c0_6, %c0_7] : memref<1x336x196xf32, #tpu.memory_space<vmem>>, vector<1x336x196xf32>
    %8 = vector.shape_cast %7 : vector<1x336x196xf32> to vector<336x196xf32>
    %9 = vector.shape_cast %6 : vector<336x196xf32> to vector<1x336x196xf32>
    tpu.vector_store %arg4[%c0_5, %c0_6, %c0_7], %9 {strides = array<i32>} : memref<1x336x196xf32, #tpu.memory_space<vmem>>, vector<1x336x196xf32>,
    return
  }
  func.func @transform_0(%arg0: i32, %arg1: i32) -> (i32, i32, i32) {
    %c0_i32 = arith.constant 0 : i32
    %c0_i32_0 = arith.constant 0 : i32
    %c0_i32_1 = arith.constant 0 : i32
    return %arg0, %c0_i32, %c0_i32_0 : i32, i32, i32
  }
  func.func @transform_1(%arg0: i32, %arg1: i32) -> (i32, i32) {
    %c0_i32 = arith.constant 0 : i32
    %c0_i32_0 = arith.constant 0 : i32
    return %arg1, %c0_i32 : i32, i32
  }
  func.func @transform_2(%arg0: i32, %arg1: i32) -> (i32, i32, i32) {
    %c0_i32 = arith.constant 0 : i32
    %c0_i32_0 = arith.constant 0 : i32
    return %arg0, %arg1, %c0_i32 : i32, i32, i32
  }
}

</mosaic_0001>

<bundles_post_ra>
// kernel: tpu_custom_call.1
= control target key start
LH: loop header
LB: loop body
LE: loop exit
PB: predicated region body
PF: predicated region fallthrough
CT: control target
= control target key end

     0   :  { %7 = vsyncpa [#allocation3], 0  ;;  %s6892_s0 = inlined_call_operand.vmem [shape: f32[1,1344,196], index: 0, kind: input, shape index: {}]   ;;  %s6893_s1 = inlined_call_operand.hbm [shape: bf16[1344,1344], index: 1, kind: input, shape index: {}]   ;;  %s6894_s2 = inlined_call_operand.vmem [shape: f32[1,1344,196], index: 2, kind: output, shape index: {}]  }
   0x1   :  { %9 = vsyncpa [#allocation3 + $0x1], 0  ;;  %s5362_s9 = smov 0   ;;  %s5364_s10 = smov 0  }
   0x2   :  { %s5366_s11 = smov 0   ;;  %s5368_s12 = smov 0  }
   0x3   :  { %s5370_s13 = smov 0   ;;  %s5372_s14 = smov 0  }
   0x4 LB: > { %s4179_s15 = sadd.s32 4294967295, %s5341_s14   ;;  %s24_s16 = sadd.s32 1, %s5337_s13  ;;  %s5341_s14 = sphi %s5372_s14, %s15_s14   ;;  %s5337_s13 = sphi %s5370_s13, %s6902_s13   ;;  %s5333_s12 = sphi %s5368_s12, %s6901_s12   ;;  %s5329_s11 = sphi %s5366_s11, %s6900_s11   ;;  %s5325_s10 = sphi %s5364_s10, %s6899_s10   ;;  %s5321_s9 = sphi %s5362_s9, %s6898_s9  }
   0x5   : > { %p25_p0 = scmp.ge.s32.totalorder %s24_s16, 4  ;;  %s60_s17 = sadd.s32 1, %s5329_s11 }
   0x6   : > { %p67_p1 = scmp.ne.s32.totalorder %s5329_s11, %s5325_s10  ;;  %p68_p2 = scmp.eq.s32.totalorder %s5341_s14, 0 }
   0x7   : > { %s6904_s16 = smov (%p25_p0, %s24_s16), 0  ;;  %p73_p4 = scmp.ne.s32.totalorder %s5325_s10, %s5321_s9 }
   0x8   : > { %p69_p3 = por %p68_p2, %p67_p1  ;;  %s57_s18 = ssub.s32 %s5337_s13, %s6904_s16 }
   0x9   : > { %p74_p5 = scmp.eq.s32.totalorder %s4179_s15, 0  ;;  %p58_p6 = scmp.eq.s32.totalorder %s57_s18, 0 }
   0xa   : > { %p4872_p8 = scmp.lt.s32.totalorder %s5341_s14, 4  ;;  %s133_s21 = sand.u32 1, %s5329_s11  }
   0xb   : > { %p5401_p7 = por %p74_p5, %p73_p4  ;;  %s4863_s22 = smul.u32 1848, %s133_s21 }
   0xc   : > { %s5407_s20 = scalar_select %p58_p6, %s5329_s11, %s60_s17  }
   0xd   : > { %s4873_s23 = smul.u32 29568, %s5337_s13  ;;  %p5411_p9 = pnand %p4872_p8, %p69_p3 }
   0xe   : > { %s137_s28 = scalar_lea.vmem [#allocation2], %s4863_s22  ;;  %s5423_s30 = scalar_lea.sflag [#allocation3], %s133_s21 }
   0xf   : > { %s5418_s27 = scalar_lea.hbm %s6893_s1, %s4873_s23  ;;  %s145_s29 = sshll.u32 %s137_s28, 4  ;;  %s5420_s29 = int_to_ptr.vmem [resolvable:$true] %s145_s29 }
  0x10   : > { %s5261_s3 = scalar_lea.hbm %s5418_s27, 29568  ;;  %p5263_p12 = pneg %p5411_p9 }
  0x11   : > { %p5262_p11 = scmp.ne.s32.totalorder %s5418_s27, %s5261_s3  ;;  %s5266_s6 = scalar_lea.hbm %s6893_s1, 118272 }
  0x12   : > { %p5267_p1 = scmp.lt.u32.totalorder %s5418_s27, %s6893_s1  ;;  %p5268_p2 = scmp.lt.u32.totalorder %s5266_s6, %s5261_s3 }
  0x13   : > { %p5264_p13 = pnand %p5263_p12, %p5262_p11  ;;  %p5270_p4 = scmp.lt.u32.totalorder %s5261_s3, %s5418_s27 }
  0x14   : > { %p5269_p3 = por %p5268_p2, %p5267_p1 }
  0x15   : > { %p5265_p0 = pneg %p5264_p13 }
  0x16   : > { %p5271_p5 = por %p5270_p4, %p5269_p3 }
  0x18   : > { %p5272_p6 = pnand %p5271_p5, %p5265_p0 }
  0x1a   : > { %5275 = shalt.err (!%p5272_p6)
}
  0x1b   : > { %s5276_s9 = scalar_lea.vmem %s5420_s29, 29568  ;;  %s5343_s15 = smov [#allocation2]  }
  0x1c   : > { %p5277_p8 = scmp.ne.s32.totalorder %s5420_s29, %s5276_s9  ;;  %s5281_s17 = sshll.u32 %s5343_s15, 4  ;;  %s5282_s17 = int_to_ptr.vmem [resolvable:$false] %s5281_s17 }
  0x1d   : > { %s5283_s18 = scalar_lea.vmem %s5282_s17, 59136  ;;  %p5284_p10 = scmp.lt.s32.totalorder %s5420_s29, %s5282_s17 }
  0x1e   : > { %p5279_p11 = pnand %p5277_p8, %p5263_p12  ;;  %p5285_p1 = scmp.lt.s32.totalorder %s5283_s18, %s5276_s9 }
  0x20   : > { %p5280_p13 = pneg %p5279_p11  ;;  %p5286_p2 = por %p5285_p1, %p5284_p10 }
  0x22   : > { %p5287_p3 = pnand %p5286_p2, %p5280_p13 }
  0x24   : > { %5290 = shalt.err (!%p5287_p3)
}
  0x25   : > { %s5344_s21 = smov 704   ;;  %s5345_s22 = smov 44  }
  0x26   : > { %4871 = dma.hbm_to_vmem [thread:$0]  (!%p5411_p9), %s5418_s27, 29568, %s5420_s29, %s5423_s30, %s5344_s21, %s5344_s21, %s5345_s22  }
  0x27   : > { %p153_p12 = scmp.lt.s32.totalorder %s5341_s14, 5  ;;  %p6897_p0 = scmp.ge.s32.totalorder %s5341_s14, 1 }
  0x29   : > { %p154_p4 = pnand %p6897_p0, %p153_p12 }
  0x2a   : > { %s159_s23 = sand.u32 (!%p154_p4), 1, %s5325_s10  }
  0x2b   : > { %157 = sbr.rel (%p154_p4) target bundleno = 836 (0x344), region = 28  ;;  %s160_s26 = scalar_lea.sflag (!%p154_p4), [#allocation3], %s159_s23 }
  0x2c   : > { %s4865_s25 = smul.u32 (!%p154_p4), 1848, %s159_s23 }
  0x2e   : > { %s5455_s28 = scalar_lea.vmem (!%p154_p4), [#allocation2], %s4865_s25 }
  0x32   : > { %5316 = dma.done.wait (%p5401_p7), %s160_s26, 29568  }
  0x33   : > { %5318 = vsyncadd (%p5401_p7), %s160_s26, 4294937728  ;;  %v213_v0 = vld [vmem:[%s6892_s0 + $0x8] sm:$0xff]  ;;  %v215_v1 = vld [vmem:[%s6892_s0 + $0x18] sm:$0xff]  ;;  %vm2459_vm0 = vcmask 523264   ;;  %s200_s15 = smul.u32 42, %s5333_s12  ;;  %vm3982_vm1 = vcmask 556032  }
  0x34   : > { %v405_v2 = vld [vmem:[%s6892_s0 + $0x608] sm:$0xff]  ;;  %v549_v3 = vmax.f32 %v213_v0, 0.0  ;;  %v551_v4 = vmax.f32 %v215_v1, 0.0  ;;  %v407_v5 = vld [vmem:[%s6892_s0 + $0x618] sm:$0xff]  ;;  %v212_v7 = vld [vmem:[%s6892_s0] sm:$0xff] }
  0x35   : > { %v741_v6 = vmax.f32 %v405_v2, 0.0  ;;  %v214_v8 = vld [vmem:[%s6892_s0 + $0x10] sm:$0xff]  ;;  %v743_v9 = vmax.f32 %v407_v5, 0.0  ;;  %v548_v10 = vmax.f32 %v212_v7, 0.0  ;;  %v404_v12 = vld [vmem:[%s6892_s0 + $0x600] sm:$0xff]  ;;  %v217_v14 = vld [vmem:[%s6892_s0 + $0x28] sm:$0xff] }
  0x36   : > { %v550_v11 = vmax.f32 %v214_v8, 0.0  ;;  %v406_v13 = vld [vmem:[%s6892_s0 + $0x610] sm:$0xff]  ;;  %v885_v15 = vpack.c.bf16 %v551_v4, %v549_v3  ;;  %v740_v16 = vmax.f32 %v404_v12, 0.0  ;;  %v219_v18 = vld [vmem:[%s6892_s0 + $0x38] sm:$0xff]  ;;  %v553_v19 = vmax.f32 %v217_v14, 0.0  ;;  %v409_v20 = vld [vmem:[%s6892_s0 + $0x628] sm:$0xff] }
  0x37   : > { %v742_v17 = vmax.f32 %v406_v13, 0.0  ;;  %v411_v21 = vld [vmem:[%s6892_s0 + $0x638] sm:$0xff]  ;;  %v981_v22 = vpack.c.bf16 %v743_v9, %v741_v6  ;;  %v555_v24 = vmax.f32 %v219_v18, 0.0  ;;  %v745_v25 = vmax.f32 %v409_v20, 0.0  ;;  %v216_v26 = vld [vmem:[%s6892_s0 + $0x20] sm:$0xff]  ;;  %v218_v27 = vld [vmem:[%s6892_s0 + $0x30] sm:$0xff] }
  0x38   : > { %v884_v23 = vpack.c.bf16 %v550_v11, %v548_v10  ;;  %v408_v28 = vld [vmem:[%s6892_s0 + $0x620] sm:$0xff]  ;;  %2523 = vmatprep.subr.bf16.mxu1 %v885_v15  ;;  %v747_v30 = vmax.f32 %v411_v21, 0.0  ;;  %v552_v31 = vmax.f32 %v216_v26, 0.0  ;;  %v554_v32 = vmax.f32 %v218_v27, 0.0  ;;  %v410_v33 = vld [vmem:[%s6892_s0 + $0x630] sm:$0xff]  ;;  %v221_v34 = vld [vmem:[%s6892_s0 + $0x48] sm:$0xff] }
  0x39   : > { %v980_v29 = vpack.c.bf16 %v742_v17, %v740_v16  ;;  %v223_v35 = vld [vmem:[%s6892_s0 + $0x58] sm:$0xff]  ;;  %3252 = vmatprep.subr.bf16.mxu0 %v981_v22  ;;  %v887_v36 = vpack.c.bf16 %v555_v24, %v553_v19  ;;  %v744_v37 = vmax.f32 %v408_v28, 0.0  ;;  %v746_v38 = vmax.f32 %v410_v33, 0.0  ;;  %v413_v40 = vld [vmem:[%s6892_s0 + $0x648] sm:$0xff]  ;;  %v220_v42 = vld [vmem:[%s6892_s0 + $0x40] sm:$0xff]  ;;  %p203_p7 = scmp.lt.s32.totalorder %s200_s15, 167 }
  0x3a   : > { %2524 = vmatpush1.bf16.msra.mxu1 %v884_v23  ;;  %v557_v39 = vmax.f32 %v221_v34, 0.0  ;;  %v415_v41 = vld [vmem:[%s6892_s0 + $0x658] sm:$0xff]  ;;  %v983_v43 = vpack.c.bf16 %v747_v30, %v745_v25  ;;  %v886_v44 = vpack.c.bf16 %v554_v32, %v552_v31  ;;  %v559_v45 = vmax.f32 %v223_v35, 0.0  ;;  %v222_v47 = vld [vmem:[%s6892_s0 + $0x50] sm:$0xff]  ;;  %v412_v48 = vld [vmem:[%s6892_s0 + $0x640] sm:$0xff] }
  0x3b   : > { %3253 = vmatpush1.bf16.msra.mxu0 %v980_v29  ;;  %v749_v46 = vmax.f32 %v413_v40, 0.0  ;;  %v414_v49 = vld [vmem:[%s6892_s0 + $0x650] sm:$0xff]  ;;  %2525 = vmatprep.subr.bf16.mxu1 %v887_v36  ;;  %v982_v50 = vpack.c.bf16 %v746_v38, %v744_v37  ;;  %v751_v51 = vmax.f32 %v415_v41, 0.0  ;;  %v556_v52 = vmax.f32 %v220_v42, 0.0  ;;  %v225_v54 = vld [vmem:[%s6892_s0 + $0x68] sm:$0xff]  ;;  %v227_v55 = vld [vmem:[%s6892_s0 + $0x78] sm:$0xff] }
  0x3c   : > { %v558_v53 = vmax.f32 %v222_v47, 0.0  ;;  %v417_v56 = vld [vmem:[%s6892_s0 + $0x668] sm:$0xff]  ;;  %3254 = vmatprep.subr.bf16.mxu0 %v983_v43  ;;  %v889_v57 = vpack.c.bf16 %v559_v45, %v557_v39  ;;  %v748_v58 = vmax.f32 %v412_v48, 0.0  ;;  %v750_v59 = vmax.f32 %v414_v49, 0.0  ;;  %v419_v61 = vld [vmem:[%s6892_s0 + $0x678] sm:$0xff]  ;;  %v224_v62 = vld [vmem:[%s6892_s0 + $0x60] sm:$0xff] }
  0x3d   : > { %v561_v60 = vmax.f32 %v225_v54, 0.0  ;;  %v226_v63 = vld [vmem:[%s6892_s0 + $0x70] sm:$0xff]  ;;  %v985_v0 = vpack.c.bf16 %v751_v51, %v749_v46  ;;  %v563_v2 = vmax.f32 %v227_v55, 0.0  ;;  %v753_v3 = vmax.f32 %v417_v56, 0.0  ;;  %v416_v4 = vld [vmem:[%s6892_s0 + $0x660] sm:$0xff]  ;;  %v229_v6 = vld [vmem:[%s6892_s0 + $0x88] sm:$0xff] }
  0x3e   : > { %2526 = vmatpush1.bf16.msra.mxu1 %v886_v44  ;;  %v888_v1 = vpack.c.bf16 %v558_v53, %v556_v52  ;;  %v418_v5 = vld [vmem:[%s6892_s0 + $0x670] sm:$0xff]  ;;  %v984_v7 = vpack.c.bf16 %v750_v59, %v748_v58  ;;  %v755_v8 = vmax.f32 %v419_v61, 0.0  ;;  %v560_v9 = vmax.f32 %v224_v62, 0.0  ;;  %v231_v11 = vld [vmem:[%s6892_s0 + $0x98] sm:$0xff]  ;;  %v421_v12 = vld [vmem:[%s6892_s0 + $0x688] sm:$0xff]  ;;  %s6906_s15 = smov (!%p203_p7, %s200_s15), 167 }
  0x3f   : > { %3255 = vmatpush1.bf16.msra.mxu0 %v982_v50  ;;  %2527 = vmatprep.subr.bf16.mxu1 %v889_v57  ;;  %v562_v10 = vmax.f32 %v226_v63, 0.0  ;;  %v423_v13 = vld [vmem:[%s6892_s0 + $0x698] sm:$0xff]  ;;  %v891_v14 = vpack.c.bf16 %v563_v2, %v561_v60  ;;  %v752_v15 = vmax.f32 %v416_v4, 0.0  ;;  %v754_v16 = vmax.f32 %v418_v5, 0.0  ;;  %v228_v18 = vld [vmem:[%s6892_s0 + $0x80] sm:$0xff]  ;;  %v230_v19 = vld [vmem:[%s6892_s0 + $0x90] sm:$0xff] }
  0x40   : > { %3256 = vmatprep.subr.bf16.mxu0 %v985_v0  ;;  %v565_v17 = vmax.f32 %v229_v6, 0.0  ;;  %v420_v20 = vld [vmem:[%s6892_s0 + $0x680] sm:$0xff]  ;;  %v987_v21 = vpack.c.bf16 %v755_v8, %v753_v3  ;;  %v567_v23 = vmax.f32 %v231_v11, 0.0  ;;  %v757_v24 = vmax.f32 %v421_v12, 0.0  ;;  %v422_v25 = vld [vmem:[%s6892_s0 + $0x690] sm:$0xff]  ;;  %v233_v26 = vld [vmem:[%s6892_s0 + $0xa8] sm:$0xff] }
  0x41   : > { %v890_v22 = vpack.c.bf16 %v562_v10, %v560_v9  ;;  %v235_v27 = vld [vmem:[%s6892_s0 + $0xb8] sm:$0xff]  ;;  %v986_v28 = vpack.c.bf16 %v754_v16, %v752_v15  ;;  %v759_v29 = vmax.f32 %v423_v13, 0.0  ;;  %v564_v30 = vmax.f32 %v228_v18, 0.0  ;;  %v425_v32 = vld [vmem:[%s6892_s0 + $0x6a8] sm:$0xff]  ;;  %v232_v34 = vld [vmem:[%s6892_s0 + $0xa0] sm:$0xff]  ;;  %s4442_s17 = sshll.u32 %s6906_s15, 4 }
  0x42   : > { %2528 = vmatpush1.bf16.msra.mxu1 %v888_v1  ;;  %v566_v31 = vmax.f32 %v230_v19, 0.0  ;;  %v427_v33 = vld [vmem:[%s6892_s0 + $0x6b8] sm:$0xff]  ;;  %v893_v35 = vpack.c.bf16 %v567_v23, %v565_v17  ;;  %v756_v36 = vmax.f32 %v420_v20, 0.0  ;;  %v758_v37 = vmax.f32 %v422_v25, 0.0  ;;  %v234_v39 = vld [vmem:[%s6892_s0 + $0xb0] sm:$0xff]  ;;  %v424_v40 = vld [vmem:[%s6892_s0 + $0x6a0] sm:$0xff]  ;;  %s6746_s22 = scalar_lea.vmem %s6894_s2, %s4442_s17 }
  0x43   : > { %3257 = vmatpush1.bf16.msra.mxu0 %v984_v7  ;;  %2529 = vmatprep.subr.bf16.mxu1 %v891_v14  ;;  %v569_v38 = vmax.f32 %v233_v26, 0.0  ;;  %v989_v41 = vpack.c.bf16 %v759_v29, %v757_v24  ;;  %v571_v42 = vmax.f32 %v235_v27, 0.0  ;;  %v761_v43 = vmax.f32 %v425_v32, 0.0  ;;  %v426_v44 = vld [vmem:[%s6892_s0 + $0x6b0] sm:$0xff]  ;;  %v237_v45 = vld [vmem:[%s6892_s0 + $0xc8] sm:$0xff]  ;;  %v239_v46 = vld [vmem:[%s6892_s0 + $0xd8] sm:$0xff] }
  0x44   : > { %3258 = vmatprep.subr.bf16.mxu0 %v987_v21  ;;  %v763_v47 = vmax.f32 %v427_v33, 0.0  ;;  %v568_v48 = vmax.f32 %v232_v34, 0.0  ;;  %v570_v49 = vmax.f32 %v234_v39, 0.0  ;;  %v429_v50 = vld [vmem:[%s6892_s0 + $0x6c8] sm:$0xff]  ;;  %v431_v51 = vld [vmem:[%s6892_s0 + $0x6d8] sm:$0xff]  ;;  %v892_v52 = vpack.c.bf16 %v566_v31, %v564_v30  ;;  %v236_v55 = vld [vmem:[%s6892_s0 + $0xc0] sm:$0xff] }
  0x45   : > { %v988_v53 = vpack.c.bf16 %v758_v37, %v756_v36  ;;  %v760_v54 = vmax.f32 %v424_v40, 0.0  ;;  %v238_v56 = vld [vmem:[%s6892_s0 + $0xd0] sm:$0xff]  ;;  %v428_v57 = vld [vmem:[%s6892_s0 + $0x6c0] sm:$0xff]  ;;  %v895_v58 = vpack.c.bf16 %v571_v42, %v569_v38  ;;  %v762_v59 = vmax.f32 %v426_v44, 0.0  ;;  %v241_v63 = vld [vmem:[%s6892_s0 + $0xe8] sm:$0xff] }
  0x46   : > { %2530 = vmatpush1.bf16.msra.mxu1 %v890_v22  ;;  %v573_v60 = vmax.f32 %v237_v45, 0.0  ;;  %v575_v61 = vmax.f32 %v239_v46, 0.0  ;;  %v430_v62 = vld [vmem:[%s6892_s0 + $0x6d0] sm:$0xff]  ;;  %v243_v0 = vld [vmem:[%s6892_s0 + $0xf8] sm:$0xff]  ;;  %v991_v1 = vpack.c.bf16 %v763_v47, %v761_v43  ;;  %v765_v2 = vmax.f32 %v429_v50, 0.0  ;;  %v433_v7 = vld [vmem:[%s6892_s0 + $0x6e8] sm:$0xff] }
  0x47   : > { %3259 = vmatpush1.bf16.msra.mxu0 %v986_v28  ;;  %2531 = vmatprep.subr.bf16.mxu1 %v893_v35  ;;  %v767_v3 = vmax.f32 %v431_v51, 0.0  ;;  %v894_v4 = vpack.c.bf16 %v570_v49, %v568_v48  ;;  %v572_v5 = vmax.f32 %v236_v55, 0.0  ;;  %v574_v6 = vmax.f32 %v238_v56, 0.0  ;;  %v435_v8 = vld [vmem:[%s6892_s0 + $0x6f8] sm:$0xff]  ;;  %v240_v13 = vld [vmem:[%s6892_s0 + $0xe0] sm:$0xff]  ;;  %v242_v14 = vld [vmem:[%s6892_s0 + $0xf0] sm:$0xff] }
  0x48   : > { %3260 = vmatprep.subr.bf16.mxu0 %v989_v41  ;;  %v764_v9 = vmax.f32 %v428_v57, 0.0  ;;  %v766_v10 = vmax.f32 %v430_v62, 0.0  ;;  %v577_v11 = vmax.f32 %v241_v63, 0.0  ;;  %v579_v12 = vmax.f32 %v243_v0, 0.0  ;;  %v432_v17 = vld [vmem:[%s6892_s0 + $0x6e0] sm:$0xff]  ;;  %v434_v21 = vld [vmem:[%s6892_s0 + $0x6f0] sm:$0xff] }
  0x49   : > { %v990_v15 = vpack.c.bf16 %v762_v59, %v760_v54  ;;  %v897_v16 = vpack.c.bf16 %v575_v61, %v573_v60  ;;  %v993_v18 = vpack.c.bf16 %v767_v3, %v765_v2  ;;  %v769_v19 = vmax.f32 %v433_v7, 0.0  ;;  %v245_v22 = vld [vmem:[%s6892_s0 + $0x108] sm:$0xff]  ;;  %v247_v23 = vld [vmem:[%s6892_s0 + $0x118] sm:$0xff]  ;;  %v244_v28 = vld [vmem:[%s6892_s0 + $0x100] sm:$0xff] }
  0x4a   : > { %2532 = vmatpush1.bf16.msra.mxu1 %v892_v52  ;;  %v771_v20 = vmax.f32 %v435_v8, 0.0  ;;  %v576_v24 = vmax.f32 %v240_v13, 0.0  ;;  %v578_v25 = vmax.f32 %v242_v14, 0.0  ;;  %v437_v26 = vld [vmem:[%s6892_s0 + $0x708] sm:$0xff]  ;;  %v439_v27 = vld [vmem:[%s6892_s0 + $0x718] sm:$0xff]  ;;  %v896_v29 = vpack.c.bf16 %v574_v6, %v572_v5  ;;  %v246_v32 = vld [vmem:[%s6892_s0 + $0x110] sm:$0xff] }
  0x4b   : > { %3261 = vmatpush1.bf16.msra.mxu0 %v988_v53  ;;  %2533 = vmatprep.subr.bf16.mxu1 %v895_v58  ;;  %v992_v30 = vpack.c.bf16 %v766_v10, %v764_v9  ;;  %v899_v31 = vpack.c.bf16 %v579_v12, %v577_v11  ;;  %v436_v33 = vld [vmem:[%s6892_s0 + $0x700] sm:$0xff]  ;;  %v438_v34 = vld [vmem:[%s6892_s0 + $0x710] sm:$0xff]  ;;  %v768_v35 = vmax.f32 %v432_v17, 0.0  ;;  %v770_v36 = vmax.f32 %v434_v21, 0.0  ;;  %v249_v39 = vld [vmem:[%s6892_s0 + $0x128] sm:$0xff] }
  0x4c   : > { %3262 = vmatprep.subr.bf16.mxu0 %v991_v1  ;;  %v581_v37 = vmax.f32 %v245_v22, 0.0  ;;  %v583_v38 = vmax.f32 %v247_v23, 0.0  ;;  %v251_v40 = vld [vmem:[%s6892_s0 + $0x138] sm:$0xff]  ;;  %v995_v41 = vpack.c.bf16 %v771_v20, %v769_v19  ;;  %v773_v42 = vmax.f32 %v437_v26, 0.0  ;;  %v441_v47 = vld [vmem:[%s6892_s0 + $0x728] sm:$0xff]  ;;  %v248_v53 = vld [vmem:[%s6892_s0 + $0x120] sm:$0xff] }
  0x4d   : > { %v775_v43 = vmax.f32 %v439_v27, 0.0  ;;  %v898_v44 = vpack.c.bf16 %v578_v25, %v576_v24  ;;  %v580_v45 = vmax.f32 %v244_v28, 0.0  ;;  %v582_v46 = vmax.f32 %v246_v32, 0.0  ;;  %v443_v48 = vld [vmem:[%s6892_s0 + $0x738] sm:$0xff]  ;;  %v250_v54 = vld [vmem:[%s6892_s0 + $0x130] sm:$0xff]  ;;  %v440_v57 = vld [vmem:[%s6892_s0 + $0x720] sm:$0xff] }
  0x4e   : > { %2534 = vmatpush1.bf16.msra.mxu1 %v894_v4  ;;  %v772_v49 = vmax.f32 %v436_v33, 0.0  ;;  %v774_v50 = vmax.f32 %v438_v34, 0.0  ;;  %v585_v51 = vmax.f32 %v249_v39, 0.0  ;;  %v587_v52 = vmax.f32 %v251_v40, 0.0  ;;  %v442_v61 = vld [vmem:[%s6892_s0 + $0x730] sm:$0xff]  ;;  %v253_v62 = vld [vmem:[%s6892_s0 + $0x148] sm:$0xff] }
  0x4f   : > { %3263 = vmatpush1.bf16.msra.mxu0 %v990_v15  ;;  %2535 = vmatprep.subr.bf16.mxu1 %v897_v16  ;;  %v994_v55 = vpack.c.bf16 %v770_v36, %v768_v35  ;;  %v901_v56 = vpack.c.bf16 %v583_v38, %v581_v37  ;;  %v997_v58 = vpack.c.bf16 %v775_v43, %v773_v42  ;;  %v777_v59 = vmax.f32 %v441_v47, 0.0  ;;  %v255_v63 = vld [vmem:[%s6892_s0 + $0x158] sm:$0xff]  ;;  %v445_v2 = vld [vmem:[%s6892_s0 + $0x748] sm:$0xff]  ;;  %v252_v4 = vld [vmem:[%s6892_s0 + $0x140] sm:$0xff] }
  0x50   : > { %3264 = vmatprep.subr.bf16.mxu0 %v993_v18  ;;  %v779_v60 = vmax.f32 %v443_v48, 0.0  ;;  %v584_v0 = vmax.f32 %v248_v53, 0.0  ;;  %v586_v1 = vmax.f32 %v250_v54, 0.0  ;;  %v447_v3 = vld [vmem:[%s6892_s0 + $0x758] sm:$0xff]  ;;  %v900_v5 = vpack.c.bf16 %v582_v46, %v580_v45  ;;  %v254_v8 = vld [vmem:[%s6892_s0 + $0x150] sm:$0xff]  ;;  %v444_v9 = vld [vmem:[%s6892_s0 + $0x740] sm:$0xff] }
  0x51   : > { %v996_v6 = vpack.c.bf16 %v774_v50, %v772_v49  ;;  %v903_v7 = vpack.c.bf16 %v587_v52, %v585_v51  ;;  %v446_v10 = vld [vmem:[%s6892_s0 + $0x750] sm:$0xff]  ;;  %v776_v11 = vmax.f32 %v440_v57, 0.0  ;;  %v778_v12 = vmax.f32 %v442_v61, 0.0  ;;  %v257_v15 = vld [vmem:[%s6892_s0 + $0x168] sm:$0xff]  ;;  %v259_v16 = vld [vmem:[%s6892_s0 + $0x178] sm:$0xff] }
  0x52   : > { %2536 = vmatpush1.bf16.msra.mxu1 %v896_v29  ;;  %v589_v13 = vmax.f32 %v253_v62, 0.0  ;;  %v591_v14 = vmax.f32 %v255_v63, 0.0  ;;  %v999_v17 = vpack.c.bf16 %v779_v60, %v777_v59  ;;  %v781_v18 = vmax.f32 %v445_v2, 0.0  ;;  %v449_v23 = vld [vmem:[%s6892_s0 + $0x768] sm:$0xff]  ;;  %v451_v24 = vld [vmem:[%s6892_s0 + $0x778] sm:$0xff]  ;;  %v256_v25 = vld [vmem:[%s6892_s0 + $0x160] sm:$0xff] }
  0x53   : > { %3265 = vmatpush1.bf16.msra.mxu0 %v992_v30  ;;  %2537 = vmatprep.subr.bf16.mxu1 %v899_v31  ;;  %v783_v19 = vmax.f32 %v447_v3, 0.0  ;;  %v902_v20 = vpack.c.bf16 %v586_v1, %v584_v0  ;;  %v588_v21 = vmax.f32 %v252_v4, 0.0  ;;  %v590_v22 = vmax.f32 %v254_v8, 0.0  ;;  %v258_v30 = vld [vmem:[%s6892_s0 + $0x170] sm:$0xff]  ;;  %v448_v31 = vld [vmem:[%s6892_s0 + $0x760] sm:$0xff]  ;;  %v261_v35 = vld [vmem:[%s6892_s0 + $0x188] sm:$0xff] }
  0x54   : > { %3266 = vmatprep.subr.bf16.mxu0 %v995_v41  ;;  %v780_v26 = vmax.f32 %v444_v9, 0.0  ;;  %v782_v27 = vmax.f32 %v446_v10, 0.0  ;;  %v593_v28 = vmax.f32 %v257_v15, 0.0  ;;  %v595_v29 = vmax.f32 %v259_v16, 0.0  ;;  %v450_v34 = vld [vmem:[%s6892_s0 + $0x770] sm:$0xff]  ;;  %v263_v36 = vld [vmem:[%s6892_s0 + $0x198] sm:$0xff] }
  0x55   : > { %v998_v32 = vpack.c.bf16 %v778_v12, %v776_v11  ;;  %v905_v33 = vpack.c.bf16 %v591_v14, %v589_v13  ;;  %v1001_v37 = vpack.c.bf16 %v783_v19, %v781_v18  ;;  %v785_v38 = vmax.f32 %v449_v23, 0.0  ;;  %v453_v40 = vld [vmem:[%s6892_s0 + $0x788] sm:$0xff]  ;;  %v455_v41 = vld [vmem:[%s6892_s0 + $0x798] sm:$0xff]  ;;  %v260_v42 = vld [vmem:[%s6892_s0 + $0x180] sm:$0xff] }
  0x56   : > { %2538 = vmatpush1.bf16.msra.mxu1 %v898_v44  ;;  %v787_v39 = vmax.f32 %v451_v24, 0.0  ;;  %v592_v43 = vmax.f32 %v256_v25, 0.0  ;;  %v594_v44 = vmax.f32 %v258_v30, 0.0  ;;  %v262_v45 = vld [vmem:[%s6892_s0 + $0x190] sm:$0xff]  ;;  %v452_v46 = vld [vmem:[%s6892_s0 + $0x780] sm:$0xff]  ;;  %v904_v48 = vpack.c.bf16 %v590_v22, %v588_v21  ;;  %v265_v51 = vld [vmem:[%s6892_s0 + $0x1a8] sm:$0xff] }
  0x57   : > { %3267 = vmatpush1.bf16.msra.mxu0 %v994_v55  ;;  %2539 = vmatprep.subr.bf16.mxu1 %v901_v56  ;;  %v454_v47 = vld [vmem:[%s6892_s0 + $0x790] sm:$0xff]  ;;  %v1000_v49 = vpack.c.bf16 %v782_v27, %v780_v26  ;;  %v907_v50 = vpack.c.bf16 %v595_v29, %v593_v28  ;;  %v267_v52 = vld [vmem:[%s6892_s0 + $0x1b8] sm:$0xff]  ;;  %v784_v53 = vmax.f32 %v448_v31, 0.0  ;;  %v786_v54 = vmax.f32 %v450_v34, 0.0  ;;  %v457_v60 = vld [vmem:[%s6892_s0 + $0x7a8] sm:$0xff] }
  0x58   : > { %3268 = vmatprep.subr.bf16.mxu0 %v997_v58  ;;  %v597_v55 = vmax.f32 %v261_v35, 0.0  ;;  %v599_v56 = vmax.f32 %v263_v36, 0.0  ;;  %v1003_v57 = vpack.c.bf16 %v787_v39, %v785_v38  ;;  %v789_v58 = vmax.f32 %v453_v40, 0.0  ;;  %v4927_v61 = vld [vmem:[%s5455_s28 + $0x4] ss:$44 sps:$4 sm:$0xff]  }
  0x59   : > { %v791_v59 = vmax.f32 %v455_v41, 0.0  ;;  %v906_v62 = vpack.c.bf16 %v594_v44, %v592_v43  ;;  %v596_v63 = vmax.f32 %v260_v42, 0.0  ;;  %v598_v0 = vmax.f32 %v262_v45, 0.0  ;;  %v459_v1 = vld [vmem:[%s6892_s0 + $0x7b8] sm:$0xff]  ;;  %v264_v2 = vld [vmem:[%s6892_s0 + $0x1a0] sm:$0xff]  ;;  %v266_v3 = vld [vmem:[%s6892_s0 + $0x1b0] sm:$0xff]  ;;  %2555 = vmatprep.mubr.bf16.mxu1 %v4927_v61 }
  0x5a   : > { %2540 = vmatpush1.bf16.msra.mxu1 %v900_v5  ;;  %v788_v4 = vmax.f32 %v452_v46, 0.0  ;;  %v790_v5 = vmax.f32 %v454_v47, 0.0  ;;  %v4930_v8 = vld [vmem:[%s5455_s28 + $0x1c] ss:$44 sps:$4 sm:$0xff]   ;;  %v1002_v9 = vpack.c.bf16 %v786_v54, %v784_v53  ;;  %v909_v10 = vpack.c.bf16 %v599_v56, %v597_v55 }
  0x5b   : > { %3269 = vmatpush1.bf16.msra.mxu0 %v996_v6  ;;  %2541 = vmatprep.subr.bf16.mxu1 %v903_v7  ;;  %v601_v6 = vmax.f32 %v265_v51, 0.0  ;;  %v603_v7 = vmax.f32 %v267_v52, 0.0  ;;  %v456_v11 = vld [vmem:[%s6892_s0 + $0x7a0] sm:$0xff]  ;;  %v458_v12 = vld [vmem:[%s6892_s0 + $0x7b0] sm:$0xff]  ;;  %v269_v13 = vld [vmem:[%s6892_s0 + $0x1c8] sm:$0xff]  ;;  %v1005_v14 = vpack.c.bf16 %v791_v59, %v789_v58  ;;  %v793_v15 = vmax.f32 %v457_v60, 0.0 }
  0x5c   : > { %3270 = vmatprep.subr.bf16.mxu0 %v999_v17  ;;  %v795_v16 = vmax.f32 %v459_v1, 0.0  ;;  %v271_v17 = vld [vmem:[%s6892_s0 + $0x1d8] sm:$0xff]  ;;  %v461_v18 = vld [vmem:[%s6892_s0 + $0x7c8] sm:$0xff]  ;;  %3284 = vmatprep.mubr.bf16.mxu0 %v4930_v8  ;;  %v908_v19 = vpack.c.bf16 %v598_v0, %v596_v63  ;;  %v1004_v21 = vpack.c.bf16 %v790_v5, %v788_v4  ;;  %v600_v23 = vmax.f32 %v264_v2, 0.0  ;;  %v268_v25 = vld [vmem:[%s6892_s0 + $0x1c0] sm:$0xff] }
  0x5d   : > { %v911_v22 = vpack.c.bf16 %v603_v7, %v601_v6  ;;  %v602_v24 = vmax.f32 %v266_v3, 0.0  ;;  %v270_v26 = vld [vmem:[%s6892_s0 + $0x1d0] sm:$0xff]  ;;  %v792_v27 = vmax.f32 %v456_v11, 0.0  ;;  %v794_v28 = vmax.f32 %v458_v12, 0.0  ;;  %v460_v31 = vld [vmem:[%s6892_s0 + $0x7c0] sm:$0xff]  ;;  %v273_v36 = vld [vmem:[%s6892_s0 + $0x1e8] sm:$0xff] }
  0x5e   : > { %2542 = vmatpush1.bf16.msra.mxu1 %v902_v20  ;;  %v463_v20 = vld [vmem:[%s6892_s0 + $0x7d8] sm:$0xff]  ;;  %v605_v29 = vmax.f32 %v269_v13, 0.0  ;;  %v607_v30 = vmax.f32 %v271_v17, 0.0  ;;  %v797_v34 = vmax.f32 %v461_v18, 0.0  ;;  %v604_v38 = vmax.f32 %v268_v25, 0.0  ;;  %v465_v40 = vld [vmem:[%s6892_s0 + $0x7e8] sm:$0xff] }
  0x5f   : > { %3271 = vmatpush1.bf16.msra.mxu0 %v998_v32  ;;  %2543 = vmatprep.subr.bf16.mxu1 %v905_v33  ;;  %v462_v32 = vld [vmem:[%s6892_s0 + $0x7d0] sm:$0xff]  ;;  %v1007_v33 = vpack.c.bf16 %v795_v16, %v793_v15  ;;  %v799_v35 = vmax.f32 %v463_v20, 0.0  ;;  %v606_v39 = vmax.f32 %v270_v26, 0.0  ;;  %v467_v41 = vld [vmem:[%s6892_s0 + $0x7f8] sm:$0xff]  ;;  %v272_v42 = vld [vmem:[%s6892_s0 + $0x1e0] sm:$0xff]  ;;  %v910_v43 = vpack.c.bf16 %v602_v24, %v600_v23 }
  0x60   : > { %3272 = vmatprep.subr.bf16.mxu0 %v1001_v37  ;;  %v275_v37 = vld [vmem:[%s6892_s0 + $0x1f8] sm:$0xff]  ;;  %v796_v44 = vmax.f32 %v460_v31, 0.0  ;;  %v798_v45 = vmax.f32 %v462_v32, 0.0  ;;  %v274_v46 = vld [vmem:[%s6892_s0 + $0x1f0] sm:$0xff]  ;;  %v464_v47 = vld [vmem:[%s6892_s0 + $0x7e0] sm:$0xff]  ;;  %v801_v54 = vmax.f32 %v465_v40, 0.0 }
  0x61   : > { %v611_v51 = vmax.f32 %v275_v37, 0.0  ;;  %v466_v52 = vld [vmem:[%s6892_s0 + $0x7f0] sm:$0xff]  ;;  %v1009_v53 = vpack.c.bf16 %v799_v35, %v797_v34  ;;  %v803_v55 = vmax.f32 %v467_v41, 0.0  ;;  %v277_v56 = vld [vmem:[%s6892_s0 + $0x208] sm:$0xff]  ;;  %v912_v58 = vpack.c.bf16 %v606_v39, %v604_v38  ;;  %v471_v60 = vld [vmem:[%s6892_s0 + $0x818] sm:$0xff] }
  0x62   : > { %2544 = vmatpush1.bf16.msra.mxu1 %v904_v48  ;;  %v1006_v48 = vpack.c.bf16 %v794_v28, %v792_v27  ;;  %v469_v59 = vld [vmem:[%s6892_s0 + $0x808] sm:$0xff]  ;;  %v1008_v61 = vpack.c.bf16 %v798_v45, %v796_v44  ;;  %v610_v63 = vmax.f32 %v274_v46, 0.0  ;;  %v800_v0 = vmax.f32 %v464_v47, 0.0  ;;  %v276_v1 = vld [vmem:[%s6892_s0 + $0x200] sm:$0xff]  ;;  %v278_v2 = vld [vmem:[%s6892_s0 + $0x210] sm:$0xff] }
  0x63   : > { %3273 = vmatpush1.bf16.msra.mxu0 %v1000_v49  ;;  %2545 = vmatprep.subr.bf16.mxu1 %v907_v50  ;;  %v913_v49 = vpack.c.bf16 %v607_v30, %v605_v29  ;;  %v609_v50 = vmax.f32 %v273_v36, 0.0  ;;  %v468_v3 = vld [vmem:[%s6892_s0 + $0x800] sm:$0xff]  ;;  %v802_v5 = vmax.f32 %v466_v52, 0.0  ;;  %v613_v6 = vmax.f32 %v277_v56, 0.0  ;;  %v470_v8 = vld [vmem:[%s6892_s0 + $0x810] sm:$0xff]  ;;  %v475_v15 = vld [vmem:[%s6892_s0 + $0x838] sm:$0xff] }
  0x64   : > { %3274 = vmatprep.subr.bf16.mxu0 %v1003_v57  ;;  %v279_v57 = vld [vmem:[%s6892_s0 + $0x218] sm:$0xff]  ;;  %v1011_v11 = vpack.c.bf16 %v803_v55, %v801_v54  ;;  %v805_v12 = vmax.f32 %v469_v59, 0.0  ;;  %v807_v13 = vmax.f32 %v471_v60, 0.0  ;;  %v280_v16 = vld [vmem:[%s6892_s0 + $0x220] sm:$0xff]  ;;  %v612_v18 = vmax.f32 %v276_v1, 0.0  ;;  %v282_v20 = vld [vmem:[%s6892_s0 + $0x230] sm:$0xff] }
  0x65   : > { %v915_v4 = vpack.c.bf16 %v611_v51, %v609_v50  ;;  %v615_v7 = vmax.f32 %v279_v57, 0.0  ;;  %v4925_v23 = vld [vmem:[%s5455_s28] ss:$44 sps:$4 sm:$0xff]   ;;  %v804_v25 = vmax.f32 %v468_v3, 0.0  ;;  %v806_v26 = vmax.f32 %v470_v8, 0.0  ;;  %v474_v27 = vld [vmem:[%s6892_s0 + $0x830] sm:$0xff] }
  0x66   : > { %2546 = vmatpush1.bf16.msra.mxu1 %v906_v62  ;;  %v608_v62 = vmax.f32 %v272_v42, 0.0  ;;  %v4928_v28 = vld [vmem:[%s5455_s28 + $0x18] ss:$44 sps:$4 sm:$0xff]   ;;  %v1013_v29 = vpack.c.bf16 %v807_v13, %v805_v12  ;;  %v285_v32 = vld [vmem:[%s6892_s0 + $0x248] sm:$0xff]  ;;  %v811_v36 = vmax.f32 %v475_v15, 0.0  ;;  %v616_v41 = vmax.f32 %v280_v16, 0.0 }
  0x67   : > { %3275 = vmatpush1.bf16.msra.mxu0 %v1002_v9  ;;  %2547 = vmatprep.subr.bf16.mxu1 %v909_v10  ;;  %v281_v9 = vld [vmem:[%s6892_s0 + $0x228] sm:$0xff]  ;;  %v283_v10 = vld [vmem:[%s6892_s0 + $0x238] sm:$0xff]  ;;  %v917_v24 = vpack.c.bf16 %v615_v7, %v613_v6  ;;  %v618_v42 = vmax.f32 %v282_v20, 0.0  ;;  %v284_v44 = vld [vmem:[%s6892_s0 + $0x240] sm:$0xff]  ;;  %v1012_v45 = vpack.c.bf16 %v806_v26, %v804_v25  ;;  %v810_v46 = vmax.f32 %v474_v27, 0.0 }
  0x68   : > { %3276 = vmatprep.subr.bf16.mxu0 %v1005_v14  ;;  %v473_v14 = vld [vmem:[%s6892_s0 + $0x828] sm:$0xff]  ;;  %v914_v17 = vpack.c.bf16 %v610_v63, %v608_v62  ;;  %v617_v30 = vmax.f32 %v281_v9, 0.0  ;;  %v619_v31 = vmax.f32 %v283_v10, 0.0  ;;  %v479_v38 = vld [vmem:[%s6892_s0 + $0x858] sm:$0xff]  ;;  %v621_v47 = vmax.f32 %v285_v32, 0.0  ;;  %v476_v50 = vld [vmem:[%s6892_s0 + $0x840] sm:$0xff] }
  0x69   : > { %v4931_v34 = vld [vmem:[%s5455_s28 + $0x5c] ss:$44 sps:$4 sm:$0xff]   ;;  %v809_v35 = vmax.f32 %v473_v14, 0.0  ;;  %v4933_v40 = vld [vmem:[%s5455_s28 + $0x74] ss:$44 sps:$4 sm:$0xff]   ;;  %v815_v54 = vmax.f32 %v479_v38, 0.0 }
  0x6a   : > { %2548 = vmatpush1.bf16.msra.mxu1 %v908_v19  ;;  %v614_v19 = vmax.f32 %v278_v2, 0.0  ;;  %v477_v37 = vld [vmem:[%s6892_s0 + $0x848] sm:$0xff]  ;;  %v478_v51 = vld [vmem:[%s6892_s0 + $0x850] sm:$0xff]  ;;  %v919_v52 = vpack.c.bf16 %v619_v31, %v617_v30  ;;  %v291_v57 = vld [vmem:[%s6892_s0 + $0x278] sm:$0xff]  ;;  %v620_v59 = vmax.f32 %v284_v44, 0.0  ;;  %v812_v2 = vmax.f32 %v476_v50, 0.0 }
  0x6b   : > { %3277 = vmatpush1.bf16.msra.mxu0 %v1004_v21  ;;  %2549 = vmatprep.subr.bf16.mxu1 %v911_v22  ;;  %v472_v21 = vld [vmem:[%s6892_s0 + $0x820] sm:$0xff]  ;;  %v1010_v22 = vpack.c.bf16 %v802_v5, %v800_v0  ;;  %v1015_v55 = vpack.c.bf16 %v811_v36, %v809_v35  ;;  %v289_v56 = vld [vmem:[%s6892_s0 + $0x268] sm:$0xff]  ;;  %v483_v62 = vld [vmem:[%s6892_s0 + $0x878] sm:$0xff]  ;;  %v814_v3 = vmax.f32 %v478_v51, 0.0 }
  0x6c   : > { %3278 = vmatprep.subr.bf16.mxu0 %v1007_v33  ;;  %v287_v33 = vld [vmem:[%s6892_s0 + $0x258] sm:$0xff]  ;;  %v916_v39 = vpack.c.bf16 %v614_v19, %v612_v18  ;;  %v290_v5 = vld [vmem:[%s6892_s0 + $0x270] sm:$0xff]  ;;  %v480_v6 = vld [vmem:[%s6892_s0 + $0x860] sm:$0xff]  ;;  %v625_v10 = vmax.f32 %v289_v56, 0.0 }
  0x6d   : > { %v4935_v63 = vld [vmem:[%s5455_s28 + $0x58] ss:$44 sps:$4 sm:$0xff]   ;;  %v4936_v7 = vld [vmem:[%s5455_s28 + $0x70] ss:$44 sps:$4 sm:$0xff]   ;;  %v4937_v8 = vld [vmem:[%s5455_s28 + $0xb4] ss:$44 sps:$4 sm:$0xff]  }
  0x6e   : > { %2550 = vmatpush1.bf16.msra.mxu1 %v910_v43  ;;  %v808_v43 = vmax.f32 %v472_v21, 0.0  ;;  %v482_v12 = vld [vmem:[%s6892_s0 + $0x870] sm:$0xff]  ;;  %v293_v13 = vld [vmem:[%s6892_s0 + $0x288] sm:$0xff]  ;;  %v295_v14 = vld [vmem:[%s6892_s0 + $0x298] sm:$0xff]  ;;  %v1016_v21 = vpack.c.bf16 %v814_v3, %v812_v2 }
  0x6f   : > { %3279 = vmatpush1.bf16.msra.mxu0 %v1006_v48  ;;  %2551 = vmatprep.subr.bf16.mxu1 %v913_v49  ;;  %v623_v48 = vmax.f32 %v287_v33, 0.0  ;;  %v286_v49 = vld [vmem:[%s6892_s0 + $0x250] sm:$0xff]  ;;  %v485_v18 = vld [vmem:[%s6892_s0 + $0x888] sm:$0xff]  ;;  %v487_v20 = vld [vmem:[%s6892_s0 + $0x898] sm:$0xff]  ;;  %v629_v30 = vmax.f32 %v293_v13, 0.0  ;;  %v631_v31 = vmax.f32 %v295_v14, 0.0 }
  0x70   : > { %3280 = vmatprep.subr.bf16.mxu0 %v1009_v53  ;;  %v813_v53 = vmax.f32 %v477_v37, 0.0  ;;  %v622_v60 = vmax.f32 %v286_v49, 0.0  ;;  %v1014_v0 = vpack.c.bf16 %v810_v46, %v808_v43  ;;  %v4939_v15 = vld [vmem:[%s5455_s28 + $0xcc] ss:$44 sps:$4 sm:$0xff]   ;;  %v821_v36 = vmax.f32 %v485_v18, 0.0 }
  0x71   : > { %v921_v1 = vpack.c.bf16 %v623_v48, %v621_v47  ;;  %v292_v25 = vld [vmem:[%s6892_s0 + $0x280] sm:$0xff]  ;;  %v294_v26 = vld [vmem:[%s6892_s0 + $0x290] sm:$0xff]  ;;  %v297_v33 = vld [vmem:[%s6892_s0 + $0x2a8] sm:$0xff]  ;;  %v823_v37 = vmax.f32 %v487_v20, 0.0  ;;  %v925_v51 = vpack.c.bf16 %v631_v31, %v629_v30 }
  0x72   : > { %2552 = vmatpush1.bf16.msra.mxu1 %v912_v58  ;;  %v918_v58 = vpack.c.bf16 %v618_v42, %v616_v41  ;;  %v1017_v9 = vpack.c.bf16 %v815_v54, %v813_v53  ;;  %v920_v19 = vpack.c.bf16 %v622_v60, %v620_v59  ;;  %v484_v27 = vld [vmem:[%s6892_s0 + $0x880] sm:$0xff]  ;;  %v486_v32 = vld [vmem:[%s6892_s0 + $0x890] sm:$0xff]  ;;  %v628_v38 = vmax.f32 %v292_v25, 0.0  ;;  %v489_v41 = vld [vmem:[%s6892_s0 + $0x8a8] sm:$0xff] }
  0x73   : > { %3281 = vmatpush1.bf16.msra.mxu0 %v1008_v61  ;;  %2553 = vmatprep.subr.bf16.mxu1 %v915_v4  ;;  %v481_v61 = vld [vmem:[%s6892_s0 + $0x868] sm:$0xff]  ;;  %v288_v4 = vld [vmem:[%s6892_s0 + $0x260] sm:$0xff]  ;;  %v491_v42 = vld [vmem:[%s6892_s0 + $0x8b8] sm:$0xff]  ;;  %v633_v46 = vmax.f32 %v297_v33, 0.0  ;;  %v1021_v54 = vpack.c.bf16 %v823_v37, %v821_v36 }
  0x74   : > { %3282 = vmatprep.subr.bf16.mxu0 %v1011_v11  ;;  %v627_v11 = vmax.f32 %v291_v57, 0.0  ;;  %v817_v16 = vmax.f32 %v481_v61, 0.0  ;;  %v4941_v43 = vld [vmem:[%s5455_s28 + $0xb0] ss:$44 sps:$4 sm:$0xff]   ;;  %v296_v48 = vld [vmem:[%s6892_s0 + $0x2a0] sm:$0xff]  ;;  %v827_v56 = vmax.f32 %v491_v42, 0.0 }
  0x75   : > { %v4942_v49 = vld [vmem:[%s5455_s28 + $0xc8] ss:$44 sps:$4 sm:$0xff]   ;;  %v303_v61 = vld [vmem:[%s6892_s0 + $0x2d8] sm:$0xff] }
  0x76   : > { %2554 = vmatpush1.bf16.msra.mxu1 %v914_v17  ;;  %v819_v17 = vmax.f32 %v483_v62, 0.0  ;;  %v488_v53 = vld [vmem:[%s6892_s0 + $0x8a0] sm:$0xff]  ;;  %v490_v57 = vld [vmem:[%s6892_s0 + $0x8b0] sm:$0xff]  ;;  %v301_v60 = vld [vmem:[%s6892_s0 + $0x2c8] sm:$0xff] }
  0x77   : > { %3283 = vmatpush1.bf16.msra.mxu0 %v1010_v22  ;;  %2766 = vmatprep.subr.bf16.mxu1 %v917_v24  ;;  %v624_v22 = vmax.f32 %v288_v4, 0.0  ;;  %v816_v24 = vmax.f32 %v480_v6, 0.0  ;;  %v4945_v62 = vld [vmem:[%s5455_s28 + $0x124] ss:$44 sps:$4 sm:$0xff]   ;;  %v824_v3 = vmax.f32 %v488_v53, 0.0  ;;  %v826_v4 = vmax.f32 %v490_v57, 0.0 }
  0x78   : > { %3495 = vmatprep.subr.bf16.mxu0 %v1013_v29  ;;  %v818_v29 = vmax.f32 %v482_v12, 0.0  ;;  %v1019_v35 = vpack.c.bf16 %v819_v17, %v817_v16  ;;  %v639_v6 = vmax.f32 %v303_v61, 0.0  ;;  %v300_v12 = vld [vmem:[%s6892_s0 + $0x2c0] sm:$0xff]  ;;  %v302_v13 = vld [vmem:[%s6892_s0 + $0x2d0] sm:$0xff]  ;;  %v497_v33 = vld [vmem:[%s6892_s0 + $0x8e8] sm:$0xff] }
  0x79   : > { %2556 = vmatmul.mubr.bf16.vlgmr.msra.gmra.mrb[0].mxu1 %v4925_v23  ;;  %v626_v23 = vmax.f32 %v290_v5, 0.0  ;;  %v637_v5 = vmax.f32 %v301_v60, 0.0  ;;  %v636_v14 = vmax.f32 %v300_v12, 0.0  ;;  %v492_v16 = vld [vmem:[%s6892_s0 + $0x8c0] sm:$0xff]  ;;  %v494_v17 = vld [vmem:[%s6892_s0 + $0x8d0] sm:$0xff]  ;;  %v833_v37 = vmax.f32 %v497_v33, 0.0 }
  0x7a   : > { %3285 = vmatmul.mubr.bf16.vlgmr.msra.gmra.mrb[0].mxu0 %v4928_v28  ;;  %2767 = vmatpush1.bf16.msra.mxu1 %v916_v39  ;;  %v923_v28 = vpack.c.bf16 %v627_v11, %v625_v10  ;;  %v630_v39 = vmax.f32 %v294_v26, 0.0  ;;  %v1018_v50 = vpack.c.bf16 %v818_v29, %v816_v24  ;;  %v4947_v18 = vld [vmem:[%s5455_s28 + $0x108] ss:$44 sps:$4 sm:$0xff]   ;;  %v828_v20 = vmax.f32 %v492_v16, 0.0  ;;  %v307_v29 = vld [vmem:[%s6892_s0 + $0x2f8] sm:$0xff] }
  0x7b   : > { %3496 = vmatpush1.bf16.msra.mxu0 %v1012_v45  ;;  %2565 = vmatprep.mubr.bf16.mxu1 %v4931_v34  ;;  %v299_v34 = vld [vmem:[%s6892_s0 + $0x2b8] sm:$0xff]  ;;  %v922_v44 = vpack.c.bf16 %v626_v23, %v624_v22  ;;  %v822_v45 = vmax.f32 %v486_v32, 0.0  ;;  %v1022_v24 = vpack.c.bf16 %v826_v4, %v824_v3  ;;  %v929_v25 = vpack.c.bf16 %v639_v6, %v637_v5  ;;  %v498_v42 = vld [vmem:[%s6892_s0 + $0x8f0] sm:$0xff]  ;;  %v501_v53 = vld [vmem:[%s6892_s0 + $0x908] sm:$0xff] }
  0x7c   : > { %3294 = vmatprep.mubr.bf16.mxu0 %v4933_v40  ;;  %2768 = vmatprep.subr.bf16.mxu1 %v919_v52  ;;  %v820_v40 = vmax.f32 %v484_v27, 0.0  ;;  %v635_v47 = vmax.f32 %v299_v34, 0.0  ;;  %v298_v52 = vld [vmem:[%s6892_s0 + $0x2b0] sm:$0xff]  ;;  %v924_v59 = vpack.c.bf16 %v630_v39, %v628_v38  ;;  %v4948_v22 = vld [vmem:[%s5455_s28 + $0x120] ss:$44 sps:$4 sm:$0xff]   ;;  %v643_v32 = vmax.f32 %v307_v29, 0.0 }
  0x7d   : > { %3497 = vmatprep.subr.bf16.mxu0 %v1015_v55  ;;  %v825_v55 = vmax.f32 %v489_v41, 0.0  ;;  %v634_v2 = vmax.f32 %v298_v52, 0.0  ;;  %v4949_v23 = vld [vmem:[%s5455_s28 + $0x164] ss:$44 sps:$4 sm:$0xff]   ;;  %v4951_v26 = vld [vmem:[%s5455_s28 + $0x17c] ss:$44 sps:$4 sm:$0xff]  }
  0x7e   : > { %2769 = vmatpush1.bf16.msra.mxu1 %v918_v58  ;;  %v4943_v58 = vld [vmem:[%s5455_s28 + $0x10c] ss:$44 sps:$4 sm:$0xff]   ;;  %v4955_v3 = vld [vmem:[%s5455_s28 + $0x1bc] ss:$44 sps:$4 sm:$0xff]  }
  0x7f   : > { %3498 = vmatpush1.bf16.msra.mxu0 %v1014_v0  ;;  %2770 = vmatprep.subr.bf16.mxu1 %v921_v1  ;;  %v927_v0 = vpack.c.bf16 %v635_v47, %v633_v46  ;;  %v632_v1 = vmax.f32 %v296_v48, 0.0  ;;  %v499_v34 = vld [vmem:[%s6892_s0 + $0x8f8] sm:$0xff]  ;;  %v306_v39 = vld [vmem:[%s6892_s0 + $0x2f0] sm:$0xff]  ;;  %v496_v41 = vld [vmem:[%s6892_s0 + $0x8e0] sm:$0xff]  ;;  %v834_v46 = vmax.f32 %v498_v42, 0.0 }
  0x80   : > { %3499 = vmatprep.subr.bf16.mxu0 %v1017_v9  ;;  %v1023_v9 = vpack.c.bf16 %v827_v56, %v825_v55  ;;  %v835_v38 = vmax.f32 %v499_v34, 0.0  ;;  %v309_v48 = vld [vmem:[%s6892_s0 + $0x308] sm:$0xff]  ;;  %v4954_v55 = vld [vmem:[%s5455_s28 + $0x178] ss:$44 sps:$4 sm:$0xff]  }
  0x81   : > { %2566 = vmatmul.mubr.bf16.gmra.mrb[4].mxu1 %v4935_v63  ;;  %v1020_v63 = vpack.c.bf16 %v822_v45, %v820_v40  ;;  %v832_v45 = vmax.f32 %v496_v41, 0.0  ;;  %v645_v52 = vmax.f32 %v309_v48, 0.0  ;;  %v308_v60 = vld [vmem:[%s6892_s0 + $0x300] sm:$0xff]  ;;  %v310_v61 = vld [vmem:[%s6892_s0 + $0x310] sm:$0xff]  ;;  %v507_v16 = vld [vmem:[%s6892_s0 + $0x938] sm:$0xff] }
  0x82   : > { %3295 = vmatmul.mubr.bf16.gmra.mrb[4].mxu0 %v4936_v7  ;;  %2575 = vmatprep.mubr.bf16.mxu1 %v4937_v8  ;;  %v493_v7 = vld [vmem:[%s6892_s0 + $0x8c8] sm:$0xff]  ;;  %v495_v8 = vld [vmem:[%s6892_s0 + $0x8d8] sm:$0xff]  ;;  %v1027_v47 = vpack.c.bf16 %v835_v38, %v833_v37  ;;  %v316_v41 = vld [vmem:[%s6892_s0 + $0x340] sm:$0xff] }
  0x83   : > { %3304 = vmatprep.mubr.bf16.mxu0 %v4939_v15  ;;  %2771 = vmatpush1.bf16.msra.mxu1 %v920_v19  ;;  %v829_v10 = vmax.f32 %v493_v7, 0.0  ;;  %v831_v11 = vmax.f32 %v495_v8, 0.0  ;;  %v638_v15 = vmax.f32 %v302_v13, 0.0  ;;  %v926_v19 = vpack.c.bf16 %v634_v2, %v632_v1  ;;  %v502_v1 = vld [vmem:[%s6892_s0 + $0x910] sm:$0xff]  ;;  %v317_v34 = vld [vmem:[%s6892_s0 + $0x348] sm:$0xff] }
  0x84   : > { %3500 = vmatpush1.bf16.msra.mxu0 %v1016_v21  ;;  %2772 = vmatprep.subr.bf16.mxu1 %v923_v28  ;;  %v830_v21 = vmax.f32 %v494_v17, 0.0  ;;  %v305_v28 = vld [vmem:[%s6892_s0 + $0x2e8] sm:$0xff]  ;;  %v1026_v56 = vpack.c.bf16 %v834_v46, %v832_v45  ;;  %v838_v6 = vmax.f32 %v502_v1, 0.0  ;;  %v653_v37 = vmax.f32 %v317_v34, 0.0  ;;  %v318_v42 = vld [vmem:[%s6892_s0 + $0x350] sm:$0xff]  ;;  %v508_v46 = vld [vmem:[%s6892_s0 + $0x940] sm:$0xff] }
  0x85   : > { %3501 = vmatprep.subr.bf16.mxu0 %v1019_v35  ;;  %v1025_v27 = vpack.c.bf16 %v831_v11, %v829_v10  ;;  %v928_v30 = vpack.c.bf16 %v638_v15, %v636_v14  ;;  %v641_v31 = vmax.f32 %v305_v28, 0.0  ;;  %v304_v35 = vld [vmem:[%s6892_s0 + $0x2e0] sm:$0xff]  ;;  %v313_v10 = vld [vmem:[%s6892_s0 + $0x328] sm:$0xff]  ;;  %v315_v11 = vld [vmem:[%s6892_s0 + $0x338] sm:$0xff]  ;;  %v654_v45 = vmax.f32 %v318_v42, 0.0 }
  0x86   : > { %v1024_v36 = vpack.c.bf16 %v830_v21, %v828_v20  ;;  %v640_v40 = vmax.f32 %v304_v35, 0.0  ;;  %v4957_v7 = vld [vmem:[%s5455_s28 + $0x1d4] ss:$44 sps:$4 sm:$0xff]   ;;  %v649_v12 = vmax.f32 %v313_v10, 0.0  ;;  %v651_v13 = vmax.f32 %v315_v11, 0.0 }
  0x87   : > { %2773 = vmatpush1.bf16.msra.mxu1 %v922_v44  ;;  %v642_v44 = vmax.f32 %v306_v39, 0.0  ;;  %v505_v14 = vld [vmem:[%s6892_s0 + $0x928] sm:$0xff]  ;;  %v4959_v15 = vld [vmem:[%s5455_s28 + $0x1b8] ss:$44 sps:$4 sm:$0xff]   ;;  %v843_v21 = vmax.f32 %v507_v16, 0.0 }
  0x88   : > { %3502 = vmatpush1.bf16.msra.mxu0 %v1018_v50  ;;  %2774 = vmatprep.subr.bf16.mxu1 %v925_v51  ;;  %v311_v51 = vld [vmem:[%s6892_s0 + $0x318] sm:$0xff]  ;;  %v841_v17 = vmax.f32 %v505_v14, 0.0  ;;  %v935_v20 = vpack.c.bf16 %v651_v13, %v649_v12  ;;  %v325_v14 = vld [vmem:[%s6892_s0 + $0x388] sm:$0xff] }
  0x89   : > { %2576 = vmatmul.mubr.bf16.gmra.mrb[8].mxu1 %v4941_v43  ;;  %3503 = vmatprep.subr.bf16.mxu0 %v1021_v54  ;;  %v931_v43 = vpack.c.bf16 %v643_v32, %v641_v31  ;;  %v930_v50 = vpack.c.bf16 %v642_v44, %v640_v40  ;;  %v503_v54 = vld [vmem:[%s6892_s0 + $0x918] sm:$0xff]  ;;  %v647_v57 = vmax.f32 %v311_v51, 0.0  ;;  %v652_v44 = vmax.f32 %v316_v41, 0.0  ;;  %v521_v42 = vld [vmem:[%s6892_s0 + $0x9a8] sm:$0xff] }
  0x8a   : > { %3305 = vmatmul.mubr.bf16.gmra.mrb[8].mxu0 %v4942_v49  ;;  %2585 = vmatprep.mubr.bf16.mxu1 %v4943_v58  ;;  %v4953_v49 = vld [vmem:[%s5455_s28 + $0x160] ss:$44 sps:$4 sm:$0xff]   ;;  %v837_v58 = vmax.f32 %v501_v53, 0.0  ;;  %v1031_v29 = vpack.c.bf16 %v843_v21, %v841_v17  ;;  %v4965_v48 = vld [vmem:[%s5455_s28 + $0x210] ss:$44 sps:$4 sm:$0xff]   ;;  %v661_v17 = vmax.f32 %v325_v14, 0.0 }
  0x8b   : > { %3314 = vmatprep.mubr.bf16.mxu0 %v4945_v62  ;;  %2775 = vmatpush1.bf16.msra.mxu1 %v924_v59  ;;  %v839_v59 = vmax.f32 %v503_v54, 0.0  ;;  %v500_v62 = vld [vmem:[%s6892_s0 + $0x900] sm:$0xff]  ;;  %v933_v4 = vpack.c.bf16 %v647_v57, %v645_v52  ;;  %v319_v35 = vld [vmem:[%s6892_s0 + $0x358] sm:$0xff] }
  0x8c   : > { %3504 = vmatpush1.bf16.msra.mxu0 %v1020_v63  ;;  %2776 = vmatprep.subr.bf16.mxu1 %v927_v0  ;;  %v644_v63 = vmax.f32 %v308_v60, 0.0  ;;  %v646_v0 = vmax.f32 %v310_v61, 0.0  ;;  %v836_v2 = vmax.f32 %v500_v62, 0.0  ;;  %v4961_v28 = vld [vmem:[%s5455_s28 + $0x214] ss:$44 sps:$4 sm:$0xff]   ;;  %v655_v38 = vmax.f32 %v319_v35, 0.0 }
  0x8d   : > { %3505 = vmatprep.subr.bf16.mxu0 %v1023_v9  ;;  %v1029_v5 = vpack.c.bf16 %v839_v59, %v837_v58  ;;  %v4963_v31 = vld [vmem:[%s5455_s28 + $0x22c] ss:$44 sps:$4 sm:$0xff]   ;;  %v4966_v52 = vld [vmem:[%s5455_s28 + $0x228] ss:$44 sps:$4 sm:$0xff]  }
  0x8e   : > { %v932_v8 = vpack.c.bf16 %v646_v0, %v644_v63  ;;  %v1028_v9 = vpack.c.bf16 %v838_v6, %v836_v2  ;;  %v511_v39 = vld [vmem:[%s6892_s0 + $0x958] sm:$0xff]  ;;  %v321_v58 = vld [vmem:[%s6892_s0 + $0x368] sm:$0xff]  ;;  %v320_v0 = vld [vmem:[%s6892_s0 + $0x360] sm:$0xff] }
  0x8f   : > { %2777 = vmatpush1.bf16.msra.mxu1 %v926_v19  ;;  %v4960_v19 = vld [vmem:[%s5455_s28 + $0x1d0] ss:$44 sps:$4 sm:$0xff]   ;;  %v4967_v53 = vld [vmem:[%s5455_s28 + $0x26c] ss:$44 sps:$4 sm:$0xff]   ;;  %v657_v60 = vmax.f32 %v321_v58, 0.0 }
  0x90   : > { %3506 = vmatpush1.bf16.msra.mxu0 %v1022_v24  ;;  %2778 = vmatprep.subr.bf16.mxu1 %v929_v25  ;;  %v504_v24 = vld [vmem:[%s6892_s0 + $0x920] sm:$0xff]  ;;  %v323_v59 = vld [vmem:[%s6892_s0 + $0x378] sm:$0xff]  ;;  %v513_v62 = vld [vmem:[%s6892_s0 + $0x968] sm:$0xff] }
  0x91   : > { %2586 = vmatmul.mubr.bf16.gmra.mrb[12].mxu1 %v4947_v18  ;;  %3507 = vmatprep.subr.bf16.mxu0 %v1025_v27  ;;  %v312_v18 = vld [vmem:[%s6892_s0 + $0x320] sm:$0xff]  ;;  %v840_v27 = vmax.f32 %v504_v24, 0.0  ;;  %v659_v61 = vmax.f32 %v323_v59, 0.0  ;;  %v515_v63 = vld [vmem:[%s6892_s0 + $0x978] sm:$0xff]  ;;  %v849_v1 = vmax.f32 %v513_v62, 0.0  ;;  %v514_v6 = vld [vmem:[%s6892_s0 + $0x970] sm:$0xff] }
  0x92   : > { %3315 = vmatmul.mubr.bf16.gmra.mrb[12].mxu0 %v4948_v22  ;;  %2595 = vmatprep.mubr.bf16.mxu1 %v4949_v23  ;;  %v314_v22 = vld [vmem:[%s6892_s0 + $0x330] sm:$0xff]  ;;  %v648_v23 = vmax.f32 %v312_v18, 0.0  ;;  %v851_v2 = vmax.f32 %v515_v63, 0.0  ;;  %v850_v10 = vmax.f32 %v514_v6, 0.0  ;;  %v327_v16 = vld [vmem:[%s6892_s0 + $0x398] sm:$0xff]  ;;  %v517_v18 = vld [vmem:[%s6892_s0 + $0x988] sm:$0xff] }
  0x93   : > { %3324 = vmatprep.mubr.bf16.mxu0 %v4951_v26  ;;  %2779 = vmatpush1.bf16.msra.mxu1 %v928_v30  ;;  %v650_v25 = vmax.f32 %v314_v22, 0.0  ;;  %v506_v26 = vld [vmem:[%s6892_s0 + $0x930] sm:$0xff]  ;;  %v853_v21 = vmax.f32 %v517_v18, 0.0  ;;  %v4972_v24 = vld [vmem:[%s5455_s28 + $0x280] ss:$44 sps:$4 sm:$0xff]  }
  0x94   : > { %3508 = vmatpush1.bf16.msra.mxu0 %v1024_v36  ;;  %2780 = vmatprep.subr.bf16.mxu1 %v931_v43  ;;  %v842_v30 = vmax.f32 %v506_v26, 0.0  ;;  %v509_v36 = vld [vmem:[%s6892_s0 + $0x948] sm:$0xff]  ;;  %v847_v43 = vmax.f32 %v511_v39, 0.0  ;;  %v1035_v11 = vpack.c.bf16 %v851_v2, %v849_v1  ;;  %v335_v63 = vld [vmem:[%s6892_s0 + $0x3d8] sm:$0xff]  ;;  %v334_v6 = vld [vmem:[%s6892_s0 + $0x3d0] sm:$0xff] }
  0x95   : > { %3509 = vmatprep.subr.bf16.mxu0 %v1027_v47  ;;  %v934_v32 = vpack.c.bf16 %v650_v25, %v648_v23  ;;  %v845_v40 = vmax.f32 %v509_v36, 0.0  ;;  %v510_v47 = vld [vmem:[%s6892_s0 + $0x950] sm:$0xff]  ;;  %v324_v23 = vld [vmem:[%s6892_s0 + $0x380] sm:$0xff]  ;;  %v333_v62 = vld [vmem:[%s6892_s0 + $0x3c8] sm:$0xff]  ;;  %v671_v2 = vmax.f32 %v335_v63, 0.0 }
  0x96   : > { %v1030_v33 = vpack.c.bf16 %v842_v30, %v840_v27  ;;  %v846_v51 = vmax.f32 %v510_v47, 0.0  ;;  %v326_v25 = vld [vmem:[%s6892_s0 + $0x390] sm:$0xff]  ;;  %v660_v26 = vmax.f32 %v324_v23, 0.0  ;;  %v4977_v39 = vld [vmem:[%s5455_s28 + $0x2c0] ss:$44 sps:$4 sm:$0xff]   ;;  %v669_v1 = vmax.f32 %v333_v62, 0.0 }
  0x97   : > { %2781 = vmatpush1.bf16.msra.mxu1 %v930_v50  ;;  %v844_v50 = vmax.f32 %v508_v46, 0.0  ;;  %v1033_v54 = vpack.c.bf16 %v847_v43, %v845_v40  ;;  %v4973_v27 = vld [vmem:[%s5455_s28 + $0x2c4] ss:$44 sps:$4 sm:$0xff]   ;;  %v662_v30 = vmax.f32 %v326_v25, 0.0  ;;  %v857_v46 = vmax.f32 %v521_v42, 0.0 }
  0x98   : > { %3510 = vmatpush1.bf16.msra.mxu0 %v1026_v56  ;;  %2782 = vmatprep.subr.bf16.mxu1 %v933_v4  ;;  %v4969_v56 = vld [vmem:[%s5455_s28 + $0x284] ss:$44 sps:$4 sm:$0xff]   ;;  %v656_v4 = vmax.f32 %v320_v0, 0.0  ;;  %v4981_v59 = vld [vmem:[%s5455_s28 + $0x334] ss:$44 sps:$4 sm:$0xff]  }
  0x99   : > { %2596 = vmatmul.mubr.bf16.gmra.mrb[16].mxu1 %v4953_v49  ;;  %3511 = vmatprep.subr.bf16.mxu0 %v1029_v5  ;;  %v937_v49 = vpack.c.bf16 %v655_v38, %v653_v37  ;;  %v1032_v57 = vpack.c.bf16 %v846_v51, %v844_v50  ;;  %v512_v5 = vld [vmem:[%s6892_s0 + $0x960] sm:$0xff]  ;;  %v940_v35 = vpack.c.bf16 %v662_v30, %v660_v26  ;;  %v329_v38 = vld [vmem:[%s6892_s0 + $0x3a8] sm:$0xff]  ;;  %v331_v40 = vld [vmem:[%s6892_s0 + $0x3b8] sm:$0xff] }
  0x9a   : > { %3325 = vmatmul.mubr.bf16.gmra.mrb[16].mxu0 %v4954_v55  ;;  %2605 = vmatprep.mubr.bf16.mxu1 %v4955_v3  ;;  %v936_v55 = vpack.c.bf16 %v654_v45, %v652_v44  ;;  %v322_v3 = vld [vmem:[%s6892_s0 + $0x370] sm:$0xff]  ;;  %v665_v41 = vmax.f32 %v329_v38, 0.0  ;;  %v523_v43 = vld [vmem:[%s6892_s0 + $0x9b8] sm:$0xff]  ;;  %v667_v45 = vmax.f32 %v331_v40, 0.0  ;;  %v520_v50 = vld [vmem:[%s6892_s0 + $0x9a0] sm:$0xff] }
  0x9b   : > { %3334 = vmatprep.mubr.bf16.mxu0 %v4957_v7  ;;  %2783 = vmatpush1.bf16.msra.mxu1 %v932_v8  ;;  %v939_v7 = vpack.c.bf16 %v659_v61, %v657_v60  ;;  %v658_v8 = vmax.f32 %v322_v3, 0.0  ;;  %v4978_v44 = vld [vmem:[%s5455_s28 + $0x2d8] ss:$44 sps:$4 sm:$0xff]   ;;  %v859_v47 = vmax.f32 %v523_v43, 0.0  ;;  %v525_v0 = vld [vmem:[%s6892_s0 + $0x9c8] sm:$0xff] }
  0x9c   : > { %3512 = vmatpush1.bf16.msra.mxu0 %v1028_v9  ;;  %2784 = vmatprep.subr.bf16.mxu1 %v935_v20  ;;  %v848_v9 = vmax.f32 %v512_v5, 0.0  ;;  %v663_v20 = vmax.f32 %v327_v16, 0.0  ;;  %v527_v3 = vld [vmem:[%s6892_s0 + $0x9d8] sm:$0xff]  ;;  %v332_v5 = vld [vmem:[%s6892_s0 + $0x3c0] sm:$0xff]  ;;  %v529_v25 = vld [vmem:[%s6892_s0 + $0x9e8] sm:$0xff] }
  0x9d   : > { %3513 = vmatprep.subr.bf16.mxu0 %v1031_v29  ;;  %v938_v12 = vpack.c.bf16 %v658_v8, %v656_v4  ;;  %v861_v4 = vmax.f32 %v525_v0, 0.0  ;;  %v668_v8 = vmax.f32 %v332_v5, 0.0  ;;  %v4984_v16 = vld [vmem:[%s5455_s28 + $0x330] ss:$44 sps:$4 sm:$0xff]   ;;  %v336_v30 = vld [vmem:[%s6892_s0 + $0x3e0] sm:$0xff] }
  0x9e   : > { %v1034_v13 = vpack.c.bf16 %v850_v10, %v848_v9  ;;  %v670_v9 = vmax.f32 %v334_v6, 0.0  ;;  %v524_v10 = vld [vmem:[%s6892_s0 + $0x9c0] sm:$0xff]  ;;  %v531_v26 = vld [vmem:[%s6892_s0 + $0x9f8] sm:$0xff] }
  0x9f   : > { %2785 = vmatpush1.bf16.msra.mxu1 %v934_v32  ;;  %v4975_v32 = vld [vmem:[%s5455_s28 + $0x2dc] ss:$44 sps:$4 sm:$0xff]   ;;  %v5005_v63 = vld [vmem:[%s5455_s28 + $0x494] ss:$44 sps:$4 sm:$0xff]   ;;  %v5007_v0 = vld [vmem:[%s5455_s28 + $0x478] ss:$44 sps:$4 sm:$0xff]  }
  0xa0   : > { %3514 = vmatpush1.bf16.msra.mxu0 %v1030_v33  ;;  %2786 = vmatprep.subr.bf16.mxu1 %v937_v49  ;;  %v518_v33 = vld [vmem:[%s6892_s0 + $0x990] sm:$0xff]  ;;  %v944_v18 = vpack.c.bf16 %v670_v9, %v668_v8  ;;  %v5020_v9 = vld [vmem:[%s5455_s28 + $0x540] ss:$44 sps:$4 sm:$0xff]  }
  0xa1   : > { %2606 = vmatmul.mubr.bf16.gmra.mrb[20].mxu1 %v4959_v15  ;;  %3515 = vmatprep.subr.bf16.mxu0 %v1033_v54  ;;  %v4971_v15 = vld [vmem:[%s5455_s28 + $0x268] ss:$44 sps:$4 sm:$0xff]   ;;  %v854_v36 = vmax.f32 %v518_v33, 0.0  ;;  %v856_v54 = vmax.f32 %v520_v50, 0.0  ;;  %v672_v33 = vmax.f32 %v336_v30, 0.0 }
  0xa2   : > { %3335 = vmatmul.mubr.bf16.gmra.mrb[20].mxu0 %v4960_v19  ;;  %2615 = vmatprep.mubr.bf16.mxu1 %v4961_v28  ;;  %v519_v19 = vld [vmem:[%s6892_s0 + $0x998] sm:$0xff]  ;;  %v941_v28 = vpack.c.bf16 %v663_v20, %v661_v17  ;;  %v330_v49 = vld [vmem:[%s6892_s0 + $0x3b0] sm:$0xff] }
  0xa3   : > { %3344 = vmatprep.mubr.bf16.mxu0 %v4963_v31  ;;  %2787 = vmatpush1.bf16.msra.mxu1 %v936_v55  ;;  %v855_v22 = vmax.f32 %v519_v19, 0.0  ;;  %v516_v31 = vld [vmem:[%s6892_s0 + $0x980] sm:$0xff] }
  0xa4   : > { %3516 = vmatpush1.bf16.msra.mxu0 %v1032_v57  ;;  %2788 = vmatprep.subr.bf16.mxu1 %v939_v7  ;;  %v852_v34 = vmax.f32 %v516_v31, 0.0  ;;  %v4979_v55 = vld [vmem:[%s5455_s28 + $0x31c] ss:$44 sps:$4 sm:$0xff]   ;;  %v1039_v57 = vpack.c.bf16 %v859_v47, %v857_v46  ;;  %v863_v7 = vmax.f32 %v527_v3, 0.0  ;;  %v4985_v19 = vld [vmem:[%s5455_s28 + $0x374] ss:$44 sps:$4 sm:$0xff]  }
  0xa5   : > { %3517 = vmatprep.subr.bf16.mxu0 %v1035_v11  ;;  %v1037_v29 = vpack.c.bf16 %v855_v22, %v853_v21  ;;  %v526_v11 = vld [vmem:[%s6892_s0 + $0x9d0] sm:$0xff]  ;;  %v337_v21 = vld [vmem:[%s6892_s0 + $0x3e8] sm:$0xff]  ;;  %v339_v22 = vld [vmem:[%s6892_s0 + $0x3f8] sm:$0xff] }
  0xa6   : > { %v1036_v37 = vpack.c.bf16 %v854_v36, %v852_v34  ;;  %v862_v14 = vmax.f32 %v526_v11, 0.0  ;;  %v1041_v17 = vpack.c.bf16 %v863_v7, %v861_v4  ;;  %v673_v23 = vmax.f32 %v337_v21, 0.0  ;;  %v528_v36 = vld [vmem:[%s6892_s0 + $0x9e0] sm:$0xff]  ;;  %v343_v46 = vld [vmem:[%s6892_s0 + $0x418] sm:$0xff] }
  0xa7   : > { %2789 = vmatpush1.bf16.msra.mxu1 %v938_v12  ;;  %v945_v12 = vpack.c.bf16 %v671_v2, %v669_v1  ;;  %v864_v38 = vmax.f32 %v528_v36, 0.0  ;;  %v4990_v43 = vld [vmem:[%s5455_s28 + $0x388] ss:$44 sps:$4 sm:$0xff]   ;;  %v4993_v50 = vld [vmem:[%s5455_s28 + $0x3e4] ss:$44 sps:$4 sm:$0xff]  }
  0xa8   : > { %3518 = vmatpush1.bf16.msra.mxu0 %v1034_v13  ;;  %2790 = vmatprep.subr.bf16.mxu1 %v941_v28  ;;  %v860_v13 = vmax.f32 %v524_v10, 0.0  ;;  %v865_v28 = vmax.f32 %v529_v25, 0.0  ;;  %v5003_v62 = vld [vmem:[%s5455_s28 + $0x47c] ss:$44 sps:$4 sm:$0xff]   ;;  %v5009_v2 = vld [vmem:[%s5455_s28 + $0x4d4] ss:$44 sps:$4 sm:$0xff]  }
  0xa9   : > { %2616 = vmatmul.mubr.bf16.gmra.mrb[24].mxu1 %v4965_v48  ;;  %3519 = vmatprep.subr.bf16.mxu0 %v1037_v29  ;;  %v328_v48 = vld [vmem:[%s6892_s0 + $0x3a0] sm:$0xff]  ;;  %v867_v29 = vmax.f32 %v531_v26, 0.0  ;;  %v5008_v1 = vld [vmem:[%s5455_s28 + $0x490] ss:$44 sps:$4 sm:$0xff]  }
  0xaa   : > { %3345 = vmatmul.mubr.bf16.gmra.mrb[24].mxu0 %v4966_v52  ;;  %2625 = vmatprep.mubr.bf16.mxu1 %v4967_v53  ;;  %v664_v51 = vmax.f32 %v328_v48, 0.0  ;;  %v666_v52 = vmax.f32 %v330_v49, 0.0  ;;  %v522_v53 = vld [vmem:[%s6892_s0 + $0x9b0] sm:$0xff]  ;;  %v1040_v20 = vpack.c.bf16 %v862_v14, %v860_v13  ;;  %v533_v48 = vld [vmem:[%s6892_s0 + $0xa08] sm:$0xff]  ;;  %v535_v49 = vld [vmem:[%s6892_s0 + $0xa18] sm:$0xff] }
  0xab   : > { %3354 = vmatprep.mubr.bf16.mxu0 %v4969_v56  ;;  %2791 = vmatpush1.bf16.msra.mxu1 %v940_v35  ;;  %v943_v56 = vpack.c.bf16 %v667_v45, %v665_v41  ;;  %v858_v58 = vmax.f32 %v522_v53, 0.0  ;;  %v1043_v34 = vpack.c.bf16 %v867_v29, %v865_v28  ;;  %v4989_v41 = vld [vmem:[%s5455_s28 + $0x370] ss:$44 sps:$4 sm:$0xff]   ;;  %v871_v53 = vmax.f32 %v535_v49, 0.0  ;;  %v5011_v3 = vld [vmem:[%s5455_s28 + $0x4ec] ss:$44 sps:$4 sm:$0xff]  }
  0xac   : > { %3520 = vmatpush1.bf16.msra.mxu0 %v1036_v37  ;;  %v942_v60 = vpack.c.bf16 %v666_v52, %v664_v51  ;;  %v530_v37 = vld [vmem:[%s6892_s0 + $0x9f0] sm:$0xff]  ;;  %v341_v45 = vld [vmem:[%s6892_s0 + $0x408] sm:$0xff]  ;;  %v679_v51 = vmax.f32 %v343_v46, 0.0  ;;  %v869_v52 = vmax.f32 %v533_v48, 0.0  ;;  %v351_v49 = vld [vmem:[%s6892_s0 + $0x458] sm:$0xff] }
  0xad   : > { %2792 = vmatprep.subr.bf16.mxu1 %v943_v56  ;;  %3521 = vmatprep.subr.bf16.mxu0 %v1039_v57  ;;  %v1038_v61 = vpack.c.bf16 %v858_v58, %v856_v54  ;;  %v677_v47 = vmax.f32 %v341_v45, 0.0  ;;  %v4995_v56 = vld [vmem:[%s5455_s28 + $0x3c8] ss:$44 sps:$4 sm:$0xff]   ;;  %v4996_v57 = vld [vmem:[%s5455_s28 + $0x3e0] ss:$44 sps:$4 sm:$0xff]  }
  0xae   : > { %v4997_v58 = vld [vmem:[%s5455_s28 + $0x424] ss:$44 sps:$4 sm:$0xff]   ;;  %v5014_v5 = vld [vmem:[%s5455_s28 + $0x4e8] ss:$44 sps:$4 sm:$0xff]   ;;  %v5015_v6 = vld [vmem:[%s5455_s28 + $0x52c] ss:$44 sps:$4 sm:$0xff]  }
  0xaf   : > { %2793 = vmatpush1.bf16.msra.mxu1 %v942_v60  ;;  %v949_v54 = vpack.c.bf16 %v679_v51, %v677_v47  ;;  %v5001_v60 = vld [vmem:[%s5455_s28 + $0x420] ss:$44 sps:$4 sm:$0xff]   ;;  %v5013_v4 = vld [vmem:[%s5455_s28 + $0x4d0] ss:$44 sps:$4 sm:$0xff]   ;;  %v5019_v8 = vld [vmem:[%s5455_s28 + $0x528] ss:$44 sps:$4 sm:$0xff]  }
  0xb0   : > { %3522 = vmatpush1.bf16.msra.mxu0 %v1038_v61  ;;  %2794 = vmatprep.subr.bf16.mxu1 %v945_v12  ;;  %v5002_v61 = vld [vmem:[%s5455_s28 + $0x438] ss:$44 sps:$4 sm:$0xff]   ;;  %v5023_v11 = vld [vmem:[%s5455_s28 + $0x59c] ss:$44 sps:$4 sm:$0xff]   ;;  %v5025_v12 = vld [vmem:[%s5455_s28 + $0x580] ss:$44 sps:$4 sm:$0xff]  }
  0xb1   : > { %2626 = vmatmul.mubr.bf16.gmra.mrb[28].mxu1 %v4971_v15  ;;  %v4983_v15 = vld [vmem:[%s5455_s28 + $0x318] ss:$44 sps:$4 sm:$0xff]   ;;  %3523 = vmatprep.subr.bf16.mxu0 %v1041_v17  ;;  %v5027_v14 = vld [vmem:[%s5455_s28 + $0x5dc] ss:$44 sps:$4 sm:$0xff]   ;;  %v5044_v25 = vld [vmem:[%s5455_s28 + $0x6a0] ss:$44 sps:$4 sm:$0xff]  }
  0xb2   : > { %3355 = vmatmul.mubr.bf16.gmra.mrb[28].mxu0 %v4972_v24  ;;  %2635 = vmatprep.mubr.bf16.mxu1 %v4973_v27  ;;  %v675_v24 = vmax.f32 %v339_v22, 0.0  ;;  %v4987_v27 = vld [vmem:[%s5455_s28 + $0x38c] ss:$44 sps:$4 sm:$0xff]   ;;  %v5017_v7 = vld [vmem:[%s5455_s28 + $0x544] ss:$44 sps:$4 sm:$0xff]  }
  0xb3   : > { %3364 = vmatprep.mubr.bf16.mxu0 %v4975_v32  ;;  %2795 = vmatpush1.bf16.msra.mxu1 %v944_v18  ;;  %v338_v32 = vld [vmem:[%s6892_s0 + $0x3f0] sm:$0xff]  ;;  %v5049_v28 = vld [vmem:[%s5455_s28 + $0x6e0] ss:$44 sps:$4 sm:$0xff]  }
  0xb4   : > { %3524 = vmatpush1.bf16.msra.mxu0 %v1040_v20  ;;  %v947_v31 = vpack.c.bf16 %v675_v24, %v673_v23  ;;  %v674_v35 = vmax.f32 %v338_v32, 0.0  ;;  %v5021_v10 = vld [vmem:[%s5455_s28 + $0x584] ss:$44 sps:$4 sm:$0xff]   ;;  %v5033_v18 = vld [vmem:[%s5455_s28 + $0x634] ss:$44 sps:$4 sm:$0xff]  }
  0xb5   : > { %3525 = vmatprep.subr.bf16.mxu0 %v1043_v34  ;;  %v5026_v13 = vld [vmem:[%s5455_s28 + $0x598] ss:$44 sps:$4 sm:$0xff]   ;;  %v5032_v17 = vld [vmem:[%s5455_s28 + $0x5f0] ss:$44 sps:$4 sm:$0xff]   ;;  %v5038_v21 = vld [vmem:[%s5455_s28 + $0x648] ss:$44 sps:$4 sm:$0xff]  }
  0xb6   : > { %2796 = vmatprep.subr.bf16.mxu1 %v947_v31  ;;  %v946_v40 = vpack.c.bf16 %v674_v35, %v672_v33  ;;  %v5037_v20 = vld [vmem:[%s5455_s28 + $0x630] ss:$44 sps:$4 sm:$0xff]   ;;  %v5039_v22 = vld [vmem:[%s5455_s28 + $0x68c] ss:$44 sps:$4 sm:$0xff]   ;;  %v5043_v24 = vld [vmem:[%s5455_s28 + $0x688] ss:$44 sps:$4 sm:$0xff]  }
  0xb7   : > { %v5041_v23 = vld [vmem:[%s5455_s28 + $0x6a4] ss:$44 sps:$4 sm:$0xff]   ;;  %v5053_v30 = vld [vmem:[%s5455_s28 + $0xc] ss:$44 sps:$4 sm:$0xff]   ;;  %v5051_v45 = vld [vmem:[%s5455_s28 + $0x8] ss:$44 sps:$4 sm:$0xff]  }
  0xb8   : > { %2797 = vmatpush1.bf16.msra.mxu1 %v946_v40  ;;  %v5045_v26 = vld [vmem:[%s5455_s28 + $0x6e4] ss:$44 sps:$4 sm:$0xff]   ;;  %v5054_v51 = vld [vmem:[%s5455_s28 + $0x20] ss:$44 sps:$4 sm:$0xff]  }
  0xb9   : > { %2636 = vmatmul.mubr.bf16.gmra.mrb[32].mxu1 %v4977_v39  ;;  %v866_v39 = vmax.f32 %v530_v37, 0.0  ;;  %3009 = vmatprep.subr.bf16.mxu1 %v949_v54  ;;  %v5050_v29 = vld [vmem:[%s5455_s28 + $0x6f8] ss:$44 sps:$4 sm:$0xff]   ;;  %v345_v36 = vld [vmem:[%s6892_s0 + $0x428] sm:$0xff] }
  0xba   : > { %3365 = vmatmul.mubr.bf16.gmra.mrb[32].mxu0 %v4978_v44  ;;  %2645 = vmatprep.mubr.bf16.mxu1 %v4979_v55  ;;  %v4991_v44 = vld [vmem:[%s5455_s28 + $0x3cc] ss:$44 sps:$4 sm:$0xff]   ;;  %v1045_v55 = vpack.c.bf16 %v871_v53, %v869_v52  ;;  %v5056_v31 = vld [vmem:[%s5455_s28 + $0x24] ss:$44 sps:$4 sm:$0xff]   ;;  %v681_v48 = vmax.f32 %v345_v36, 0.0 }
  0xbb   : > { %3374 = vmatprep.mubr.bf16.mxu0 %v4981_v59  ;;  %v1042_v42 = vpack.c.bf16 %v866_v39, %v864_v38  ;;  %v4999_v59 = vld [vmem:[%s5455_s28 + $0x43c] ss:$44 sps:$4 sm:$0xff]   ;;  %v5065_v36 = vld [vmem:[%s5455_s28 + $0xd4] ss:$44 sps:$4 sm:$0xff]  }
  0xbc   : > { %v340_v32 = vld [vmem:[%s6892_s0 + $0x400] sm:$0xff]  ;;  %v342_v33 = vld [vmem:[%s6892_s0 + $0x410] sm:$0xff]  ;;  %v347_v37 = vld [vmem:[%s6892_s0 + $0x438] sm:$0xff] }
  0xbd   : > { %3526 = vmatpush1.bf16.msra.mxu0 %v1042_v42  ;;  %v532_v34 = vld [vmem:[%s6892_s0 + $0xa00] sm:$0xff]  ;;  %v534_v35 = vld [vmem:[%s6892_s0 + $0xa10] sm:$0xff]  ;;  %v676_v40 = vmax.f32 %v340_v32, 0.0  ;;  %v349_v42 = vld [vmem:[%s6892_s0 + $0x448] sm:$0xff]  ;;  %v683_v52 = vmax.f32 %v347_v37, 0.0 }
  0xbe   : > { %3738 = vmatprep.subr.bf16.mxu0 %v1045_v55  ;;  %v344_v38 = vld [vmem:[%s6892_s0 + $0x420] sm:$0xff]  ;;  %v346_v39 = vld [vmem:[%s6892_s0 + $0x430] sm:$0xff]  ;;  %v868_v46 = vmax.f32 %v532_v34, 0.0  ;;  %v870_v47 = vmax.f32 %v534_v35, 0.0 }
  0xbf   : > { %v680_v53 = vmax.f32 %v344_v38, 0.0  ;;  %v682_v54 = vmax.f32 %v346_v39, 0.0  ;;  %v348_v55 = vld [vmem:[%s6892_s0 + $0x440] sm:$0xff] }
  0xc0   : > { %v5062_v32 = vld [vmem:[%s5455_s28 + $0x78] ss:$44 sps:$4 sm:$0xff]  }
  0xc1   : > { %2646 = vmatmul.mubr.bf16.gmra.mrb[36].mxu1 %v4983_v15  ;;  %v5029_v15 = vld [vmem:[%s5455_s28 + $0x5f4] ss:$44 sps:$4 sm:$0xff]  }
  0xc2   : > { %3375 = vmatmul.mubr.bf16.gmra.mrb[36].mxu0 %v4984_v16  ;;  %2655 = vmatprep.mubr.bf16.mxu1 %v4985_v19  ;;  %v5031_v16 = vld [vmem:[%s5455_s28 + $0x5d8] ss:$44 sps:$4 sm:$0xff]  }
  0xc3   : > { %3384 = vmatprep.mubr.bf16.mxu0 %v4987_v27  ;;  %v5035_v19 = vld [vmem:[%s5455_s28 + $0x64c] ss:$44 sps:$4 sm:$0xff]   ;;  %v5047_v27 = vld [vmem:[%s5455_s28 + $0x6fc] ss:$44 sps:$4 sm:$0xff]  }
  0xc9   : > { %2656 = vmatmul.mubr.bf16.gmra.mrb[40].mxu1 %v4989_v41  ;;  %v678_v41 = vmax.f32 %v342_v33, 0.0  ;;  %v5063_v33 = vld [vmem:[%s5455_s28 + $0xbc] ss:$44 sps:$4 sm:$0xff]  }
  0xca   : > { %3385 = vmatmul.mubr.bf16.gmra.mrb[40].mxu0 %v4990_v43  ;;  %2665 = vmatprep.mubr.bf16.mxu1 %v4991_v44  ;;  %v537_v43 = vld [vmem:[%s6892_s0 + $0xa28] sm:$0xff]  ;;  %v539_v44 = vld [vmem:[%s6892_s0 + $0xa38] sm:$0xff] }
  0xcb   : > { %3394 = vmatprep.mubr.bf16.mxu0 %v4993_v50  ;;  %v536_v50 = vld [vmem:[%s6892_s0 + $0xa20] sm:$0xff] }
  0xd1   : > { %2666 = vmatmul.mubr.bf16.gmra.mrb[44].mxu1 %v4995_v56  ;;  %v538_v56 = vld [vmem:[%s6892_s0 + $0xa30] sm:$0xff] }
  0xd2   : > { %3395 = vmatmul.mubr.bf16.gmra.mrb[44].mxu0 %v4996_v57  ;;  %2675 = vmatprep.mubr.bf16.mxu1 %v4997_v58  ;;  %v541_v57 = vld [vmem:[%s6892_s0 + $0xa48] sm:$0xff] }
  0xd3   : > { %3404 = vmatprep.mubr.bf16.mxu0 %v4999_v59  ;;  %v5057_v58 = vld [vmem:[%s5455_s28 + $0x64] ss:$44 sps:$4 sm:$0xff]   ;;  %v685_v59 = vmax.f32 %v349_v42, 0.0 }
  0xd9   : > { %2676 = vmatmul.mubr.bf16.gmra.mrb[48].mxu1 %v5001_v60  ;;  %v350_v60 = vld [vmem:[%s6892_s0 + $0x450] sm:$0xff] }
  0xda   : > { %3405 = vmatmul.mubr.bf16.gmra.mrb[48].mxu0 %v5002_v61  ;;  %2685 = vmatprep.mubr.bf16.mxu1 %v5003_v62  ;;  %v353_v61 = vld [vmem:[%s6892_s0 + $0x468] sm:$0xff]  ;;  %v873_v62 = vmax.f32 %v537_v43, 0.0 }
  0xdb   : > { %3414 = vmatprep.mubr.bf16.mxu0 %v5005_v63  ;;  %v875_v63 = vmax.f32 %v539_v44, 0.0 }
  0xe1   : > { %2686 = vmatmul.mubr.bf16.gmra.mrb[52].mxu1 %v5007_v0  ;;  %v543_v0 = vld [vmem:[%s6892_s0 + $0xa58] sm:$0xff] }
  0xe2   : > { %3415 = vmatmul.mubr.bf16.gmra.mrb[52].mxu0 %v5008_v1  ;;  %2695 = vmatprep.mubr.bf16.mxu1 %v5009_v2  ;;  %v948_v1 = vpack.c.bf16 %v678_v41, %v676_v40  ;;  %v5059_v2 = vld [vmem:[%s5455_s28 + $0x7c] ss:$44 sps:$4 sm:$0xff]  }
  0xe3   : > { %3424 = vmatprep.mubr.bf16.mxu0 %v5011_v3  ;;  %v687_v3 = vmax.f32 %v351_v49, 0.0  ;;  %v356_v40 = vld [vmem:[%s6892_s0 + $0x480] sm:$0xff]  ;;  %v358_v41 = vld [vmem:[%s6892_s0 + $0x490] sm:$0xff] }
  0xe9   : > { %2696 = vmatmul.mubr.bf16.gmra.mrb[56].mxu1 %v5013_v4  ;;  %v355_v4 = vld [vmem:[%s6892_s0 + $0x478] sm:$0xff] }
  0xea   : > { %3425 = vmatmul.mubr.bf16.gmra.mrb[56].mxu0 %v5014_v5  ;;  %2705 = vmatprep.mubr.bf16.mxu1 %v5015_v6  ;;  %v872_v5 = vmax.f32 %v536_v50, 0.0  ;;  %v540_v6 = vld [vmem:[%s6892_s0 + $0xa40] sm:$0xff] }
  0xeb   : > { %3434 = vmatprep.mubr.bf16.mxu0 %v5017_v7  ;;  %v542_v7 = vld [vmem:[%s6892_s0 + $0xa50] sm:$0xff] }
  0xf1   : > { %2706 = vmatmul.mubr.bf16.gmra.mrb[60].mxu1 %v5019_v8  ;;  %v1044_v8 = vpack.c.bf16 %v870_v47, %v868_v46  ;;  %v363_v46 = vld [vmem:[%s6892_s0 + $0x4b8] sm:$0xff] }
  0xf2   : > { %3435 = vmatmul.mubr.bf16.gmra.mrb[60].mxu0 %v5020_v9  ;;  %2715 = vmatprep.mubr.bf16.mxu1 %v5021_v10  ;;  %v874_v9 = vmax.f32 %v538_v56, 0.0  ;;  %v877_v10 = vmax.f32 %v541_v57, 0.0  ;;  %v360_v56 = vld [vmem:[%s6892_s0 + $0x4a0] sm:$0xff]  ;;  %v362_v57 = vld [vmem:[%s6892_s0 + $0x4b0] sm:$0xff] }
  0xf3   : > { %3444 = vmatprep.mubr.bf16.mxu0 %v5023_v11  ;;  %v951_v11 = vpack.c.bf16 %v683_v52, %v681_v48  ;;  %v5067_v52 = vld [vmem:[%s5455_s28 + $0xb8] ss:$44 sps:$4 sm:$0xff]  }
  0xf9   : > { %2716 = vmatmul.mubr.bf16.gmra.mrb[64].mxu1 %v5025_v12  ;;  %v879_v12 = vmax.f32 %v543_v0, 0.0  ;;  %v5068_v0 = vld [vmem:[%s5455_s28 + $0xd0] ss:$44 sps:$4 sm:$0xff]  }
  0xfa   : > { %3445 = vmatmul.mubr.bf16.gmra.mrb[64].mxu0 %v5026_v13  ;;  %2725 = vmatprep.mubr.bf16.mxu1 %v5027_v14  ;;  %v545_v13 = vld [vmem:[%s6892_s0 + $0xa68] sm:$0xff]  ;;  %v684_v14 = vmax.f32 %v348_v55, 0.0  ;;  %v694_v55 = vmax.f32 %v358_v41, 0.0 }
  0xfb   : > { %3454 = vmatprep.mubr.bf16.mxu0 %v5029_v15  ;;  %v352_v15 = vld [vmem:[%s6892_s0 + $0x460] sm:$0xff]  ;;  %v1049_v34 = vpack.c.bf16 %v879_v12, %v877_v10  ;;  %v881_v35 = vmax.f32 %v545_v13, 0.0  ;;  %v366_v10 = vld [vmem:[%s6892_s0 + $0x4d0] sm:$0xff]  ;;  %v371_v12 = vld [vmem:[%s6892_s0 + $0x4f8] sm:$0xff] }
  0xfc   : > { %v688_v38 = vmax.f32 %v352_v15, 0.0  ;;  %v702_v15 = vmax.f32 %v366_v10, 0.0  ;;  %v5089_v10 = vld [vmem:[%s5455_s28 + $0x234] ss:$44 sps:$4 sm:$0xff]  }
 0x101   : > { %2726 = vmatmul.mubr.bf16.gmra.mrb[68].mxu1 %v5031_v16  ;;  %v354_v16 = vld [vmem:[%s6892_s0 + $0x470] sm:$0xff] }
 0x102   : > { %3455 = vmatmul.mubr.bf16.gmra.mrb[68].mxu0 %v5032_v17  ;;  %2735 = vmatprep.mubr.bf16.mxu1 %v5033_v18  ;;  %v1047_v17 = vpack.c.bf16 %v875_v63, %v873_v62  ;;  %v950_v18 = vpack.c.bf16 %v682_v54, %v680_v53  ;;  %v690_v39 = vmax.f32 %v354_v16, 0.0  ;;  %v692_v54 = vmax.f32 %v356_v40, 0.0  ;;  %v367_v62 = vld [vmem:[%s6892_s0 + $0x4d8] sm:$0xff] }
 0x103   : > { %3464 = vmatprep.mubr.bf16.mxu0 %v5035_v19  ;;  %v953_v19 = vpack.c.bf16 %v687_v3, %v685_v59 }
 0x104   : > { %v954_v53 = vpack.c.bf16 %v690_v39, %v688_v38  ;;  %v956_v3 = vpack.c.bf16 %v694_v55, %v692_v54 }
 0x109   : > { %2736 = vmatmul.mubr.bf16.gmra.mrb[72].mxu1 %v5037_v20  ;;  %v686_v20 = vmax.f32 %v350_v60, 0.0  ;;  %v699_v60 = vmax.f32 %v363_v46, 0.0  ;;  %v381_v46 = vld [vmem:[%s6892_s0 + $0x548] sm:$0xff] }
 0x10a   : > { %3465 = vmatmul.mubr.bf16.gmra.mrb[72].mxu0 %v5038_v21  ;;  %2745 = vmatprep.mubr.bf16.mxu1 %v5039_v22  ;;  %v689_v21 = vmax.f32 %v353_v61, 0.0  ;;  %v357_v22 = vld [vmem:[%s6892_s0 + $0x488] sm:$0xff]  ;;  %v717_v55 = vmax.f32 %v381_v46, 0.0 }
 0x10b   : > { %3474 = vmatprep.mubr.bf16.mxu0 %v5041_v23  ;;  %v359_v23 = vld [vmem:[%s6892_s0 + $0x498] sm:$0xff]  ;;  %v952_v42 = vpack.c.bf16 %v686_v20, %v684_v14  ;;  %v693_v43 = vmax.f32 %v357_v22, 0.0  ;;  %v365_v61 = vld [vmem:[%s6892_s0 + $0x4c8] sm:$0xff]  ;;  %v370_v20 = vld [vmem:[%s6892_s0 + $0x4f0] sm:$0xff] }
 0x10c   : > { %v695_v44 = vmax.f32 %v359_v23, 0.0  ;;  %v373_v22 = vld [vmem:[%s6892_s0 + $0x508] sm:$0xff]  ;;  %v375_v23 = vld [vmem:[%s6892_s0 + $0x518] sm:$0xff] }
 0x111   : > { %2746 = vmatmul.mubr.bf16.gmra.mrb[76].mxu1 %v5043_v24  ;;  %v547_v24 = vld [vmem:[%s6892_s0 + $0xa78] sm:$0xff] }
 0x112   : > { %3475 = vmatmul.mubr.bf16.gmra.mrb[76].mxu0 %v5044_v25  ;;  %2755 = vmatprep.mubr.bf16.mxu1 %v5045_v26  ;;  %v5061_v25 = vld [vmem:[%s5455_s28 + $0x60] ss:$44 sps:$4 sm:$0xff]   ;;  %v691_v26 = vmax.f32 %v355_v4, 0.0  ;;  %v883_v37 = vmax.f32 %v547_v24, 0.0  ;;  %v696_v4 = vmax.f32 %v360_v56, 0.0 }
 0x113   : > { %3484 = vmatprep.mubr.bf16.mxu0 %v5047_v27  ;;  %v1046_v27 = vpack.c.bf16 %v874_v9, %v872_v5  ;;  %v698_v5 = vmax.f32 %v362_v57, 0.0  ;;  %v364_v9 = vld [vmem:[%s6892_s0 + $0x4c0] sm:$0xff] }
 0x114   : > { %v955_v47 = vpack.c.bf16 %v691_v26, %v689_v21  ;;  %v700_v14 = vmax.f32 %v364_v9, 0.0  ;;  %v5073_v21 = vld [vmem:[%s5455_s28 + $0x110] ss:$44 sps:$4 sm:$0xff]   ;;  %v5074_v24 = vld [vmem:[%s5455_s28 + $0x128] ss:$44 sps:$4 sm:$0xff]  }
 0x115   : > { %v958_v13 = vpack.c.bf16 %v698_v5, %v696_v4  ;;  %v5077_v26 = vld [vmem:[%s5455_s28 + $0x184] ss:$44 sps:$4 sm:$0xff]   ;;  %v5085_v5 = vld [vmem:[%s5455_s28 + $0x1c0] ss:$44 sps:$4 sm:$0xff]   ;;  %v5087_v9 = vld [vmem:[%s5455_s28 + $0x21c] ss:$44 sps:$4 sm:$0xff]  }
 0x116   : > { %v380_v57 = vld [vmem:[%s6892_s0 + $0x540] sm:$0xff]  ;;  %v386_v4 = vld [vmem:[%s6892_s0 + $0x570] sm:$0xff] }
 0x119   : > { %2756 = vmatmul.mubr.bf16.gmra.mrb[80].mxu1 %v5049_v28  ;;  %v876_v28 = vmax.f32 %v540_v6, 0.0 }
 0x11a   : > { %3485 = vmatmul.mubr.bf16.gmra.mrb[80].mxu0 %v5050_v29  ;;  %2798 = vmatprep.mubr.bf16.mxu1 %v5053_v30  ;;  %v878_v29 = vmax.f32 %v542_v7, 0.0  ;;  %v544_v30 = vld [vmem:[%s6892_s0 + $0xa60] sm:$0xff]  ;;  %v701_v7 = vmax.f32 %v365_v61, 0.0 }
 0x11b   : > { %3527 = vmatprep.mubr.bf16.mxu0 %v5056_v31  ;;  %v546_v31 = vld [vmem:[%s6892_s0 + $0xa70] sm:$0xff]  ;;  %v880_v49 = vmax.f32 %v544_v30, 0.0 }
 0x11c   : > { %v1048_v48 = vpack.c.bf16 %v878_v29, %v876_v28  ;;  %v882_v50 = vmax.f32 %v546_v31, 0.0  ;;  %v706_v29 = vmax.f32 %v370_v20, 0.0  ;;  %v709_v31 = vmax.f32 %v373_v22, 0.0  ;;  %v395_v20 = vld [vmem:[%s6892_s0 + $0x5b8] sm:$0xff] }
 0x11e   : > { %v1050_v63 = vpack.c.bf16 %v882_v50, %v880_v49  ;;  %v5081_v49 = vld [vmem:[%s5455_s28 + $0x1c4] ss:$44 sps:$4 sm:$0xff]   ;;  %v5083_v50 = vld [vmem:[%s5455_s28 + $0x1dc] ss:$44 sps:$4 sm:$0xff]  }
 0x121   : > { %2799 = vmatmul.mubr.bf16.vlgmr.msra.gmra.mrb[0].mxu1 %v5051_v45  ;;  %v361_v45 = vld [vmem:[%s6892_s0 + $0x4a8] sm:$0xff] }
 0x122   : > { %3528 = vmatmul.mubr.bf16.vlgmr.msra.gmra.mrb[0].mxu0 %v5054_v51  ;;  %3010 = vmatpush1.bf16.msra.mxu1 %v948_v1  ;;  %v1051_v51 = vpack.c.bf16 %v883_v37, %v881_v35  ;;  %v697_v59 = vmax.f32 %v361_v45, 0.0  ;;  %v5069_v1 = vld [vmem:[%s5455_s28 + $0x114] ss:$44 sps:$4 sm:$0xff]  }
 0x123   : > { %3739 = vmatpush1.bf16.msra.mxu0 %v1044_v8  ;;  %2808 = vmatprep.mubr.bf16.mxu1 %v5057_v58  ;;  %v957_v58 = vpack.c.bf16 %v695_v44, %v693_v43  ;;  %v703_v8 = vmax.f32 %v367_v62, 0.0  ;;  %v377_v35 = vld [vmem:[%s6892_s0 + $0x528] sm:$0xff]  ;;  %v376_v43 = vld [vmem:[%s6892_s0 + $0x520] sm:$0xff]  ;;  %v378_v44 = vld [vmem:[%s6892_s0 + $0x530] sm:$0xff]  ;;  %v716_v62 = vmax.f32 %v380_v57, 0.0 }
 0x124   : > { %3537 = vmatprep.mubr.bf16.mxu0 %v5059_v2  ;;  %3011 = vmatprep.subr.bf16.mxu1 %v951_v11  ;;  %v5071_v2 = vld [vmem:[%s5455_s28 + $0x12c] ss:$44 sps:$4 sm:$0xff]   ;;  %v959_v6 = vpack.c.bf16 %v699_v60, %v697_v59  ;;  %v713_v41 = vmax.f32 %v377_v35, 0.0  ;;  %v5079_v45 = vld [vmem:[%s5455_s28 + $0x168] ss:$44 sps:$4 sm:$0xff]  }
 0x125   : > { %3740 = vmatprep.subr.bf16.mxu0 %v1047_v17  ;;  %v369_v11 = vld [vmem:[%s6892_s0 + $0x4e8] sm:$0xff]  ;;  %v961_v16 = vpack.c.bf16 %v703_v8, %v701_v7  ;;  %v387_v60 = vld [vmem:[%s6892_s0 + $0x578] sm:$0xff] }
 0x126   : > { %3012 = vmatpush1.bf16.msra.mxu1 %v950_v18  ;;  %v705_v17 = vmax.f32 %v369_v11, 0.0  ;;  %v707_v18 = vmax.f32 %v371_v12, 0.0  ;;  %v385_v59 = vld [vmem:[%s6892_s0 + $0x568] sm:$0xff]  ;;  %v391_v7 = vld [vmem:[%s6892_s0 + $0x598] sm:$0xff] }
 0x127   : > { %3013 = vmatprep.subr.bf16.mxu1 %v953_v19  ;;  %3741 = vmatpush1.bf16.msra.mxu0 %v1046_v27  ;;  %v368_v19 = vld [vmem:[%s6892_s0 + $0x4e0] sm:$0xff]  ;;  %v960_v27 = vpack.c.bf16 %v702_v15, %v700_v14 }
 0x128   : > { %3742 = vmatprep.subr.bf16.mxu0 %v1049_v34  ;;  %v704_v28 = vmax.f32 %v368_v19, 0.0  ;;  %v963_v30 = vpack.c.bf16 %v707_v18, %v705_v17  ;;  %v374_v34 = vld [vmem:[%s6892_s0 + $0x510] sm:$0xff]  ;;  %v388_v17 = vld [vmem:[%s6892_s0 + $0x580] sm:$0xff]  ;;  %v393_v19 = vld [vmem:[%s6892_s0 + $0x5a8] sm:$0xff] }
 0x129   : > { %2809 = vmatmul.mubr.bf16.gmra.mrb[4].mxu1 %v5061_v25  ;;  %v5075_v25 = vld [vmem:[%s5455_s28 + $0x16c] ss:$44 sps:$4 sm:$0xff]   ;;  %v710_v39 = vmax.f32 %v374_v34, 0.0  ;;  %v724_v22 = vmax.f32 %v388_v17, 0.0  ;;  %v5131_v17 = vld [vmem:[%s5455_s28 + $0x49c] ss:$44 sps:$4 sm:$0xff]  }
 0x12a   : > { %3538 = vmatmul.mubr.bf16.gmra.mrb[4].mxu0 %v5062_v32  ;;  %2818 = vmatprep.mubr.bf16.mxu1 %v5063_v33  ;;  %v711_v32 = vmax.f32 %v375_v23, 0.0  ;;  %v372_v33 = vld [vmem:[%s6892_s0 + $0x500] sm:$0xff]  ;;  %v962_v37 = vpack.c.bf16 %v706_v29, %v704_v28  ;;  %v390_v18 = vld [vmem:[%s6892_s0 + $0x590] sm:$0xff] }
 0x12b   : > { %3547 = vmatprep.mubr.bf16.mxu0 %v5065_v36  ;;  %3014 = vmatpush1.bf16.msra.mxu1 %v952_v42  ;;  %v379_v36 = vld [vmem:[%s6892_s0 + $0x538] sm:$0xff]  ;;  %v708_v38 = vmax.f32 %v372_v33, 0.0  ;;  %v726_v23 = vmax.f32 %v390_v18, 0.0  ;;  %v394_v28 = vld [vmem:[%s6892_s0 + $0x5b0] sm:$0xff] }
 0x12c   : > { %3015 = vmatprep.subr.bf16.mxu1 %v955_v47  ;;  %3743 = vmatpush1.bf16.msra.mxu0 %v1048_v48  ;;  %v965_v40 = vpack.c.bf16 %v711_v32, %v709_v31  ;;  %v715_v42 = vmax.f32 %v379_v36, 0.0  ;;  %v383_v47 = vld [vmem:[%s6892_s0 + $0x558] sm:$0xff] }
 0x12d   : > { %3744 = vmatprep.subr.bf16.mxu0 %v1051_v51  ;;  %v5080_v48 = vld [vmem:[%s5455_s28 + $0x180] ss:$44 sps:$4 sm:$0xff]   ;;  %v964_v51 = vpack.c.bf16 %v710_v39, %v708_v38  ;;  %v719_v56 = vmax.f32 %v383_v47, 0.0  ;;  %v5086_v8 = vld [vmem:[%s5455_s28 + $0x1d8] ss:$44 sps:$4 sm:$0xff]   ;;  %v972_v35 = vpack.c.bf16 %v726_v23, %v724_v22 }
 0x12e   : > { %v967_v54 = vpack.c.bf16 %v715_v42, %v713_v41  ;;  %v5091_v29 = vld [vmem:[%s5455_s28 + $0x218] ss:$44 sps:$4 sm:$0xff]   ;;  %v5092_v32 = vld [vmem:[%s5455_s28 + $0x230] ss:$44 sps:$4 sm:$0xff]   ;;  %v5093_v33 = vld [vmem:[%s5455_s28 + $0x274] ss:$44 sps:$4 sm:$0xff]  }
 0x12f   : > { %3016 = vmatpush1.bf16.msra.mxu1 %v954_v53  ;;  %v714_v53 = vmax.f32 %v378_v44, 0.0  ;;  %v399_v31 = vld [vmem:[%s6892_s0 + $0x5d8] sm:$0xff]  ;;  %v396_v41 = vld [vmem:[%s6892_s0 + $0x5c0] sm:$0xff]  ;;  %v398_v42 = vld [vmem:[%s6892_s0 + $0x5d0] sm:$0xff] }
 0x130   : > { %3017 = vmatprep.subr.bf16.mxu1 %v957_v58  ;;  %3745 = vmatpush1.bf16.msra.mxu0 %v1050_v63  ;;  %v382_v58 = vld [vmem:[%s6892_s0 + $0x550] sm:$0xff]  ;;  %v403_v44 = vld [vmem:[%s6892_s0 + $0x5f8] sm:$0xff]  ;;  %v732_v46 = vmax.f32 %v396_v41, 0.0  ;;  %v734_v47 = vmax.f32 %v398_v42, 0.0 }
 0x131   : > { %2819 = vmatmul.mubr.bf16.gmra.mrb[8].mxu1 %v5067_v52  ;;  %v712_v52 = vmax.f32 %v376_v43, 0.0  ;;  %v718_v63 = vmax.f32 %v382_v58, 0.0  ;;  %v5095_v34 = vld [vmem:[%s5455_s28 + $0x28c] ss:$44 sps:$4 sm:$0xff]   ;;  %v5140_v23 = vld [vmem:[%s5455_s28 + $0x4f0] ss:$44 sps:$4 sm:$0xff]  }
 0x132   : > { %3548 = vmatmul.mubr.bf16.gmra.mrb[8].mxu0 %v5068_v0  ;;  %2828 = vmatprep.mubr.bf16.mxu1 %v5069_v1  ;;  %v969_v0 = vpack.c.bf16 %v719_v56, %v717_v55  ;;  %v721_v1 = vmax.f32 %v385_v59, 0.0  ;;  %v401_v43 = vld [vmem:[%s6892_s0 + $0x5e8] sm:$0xff]  ;;  %v976_v57 = vpack.c.bf16 %v734_v47, %v732_v46  ;;  %v5139_v22 = vld [vmem:[%s5455_s28 + $0x4d8] ss:$44 sps:$4 sm:$0xff]  }
 0x133   : > { %3557 = vmatprep.mubr.bf16.mxu0 %v5071_v2  ;;  %3018 = vmatpush1.bf16.msra.mxu1 %v956_v3  ;;  %v966_v61 = vpack.c.bf16 %v714_v53, %v712_v52  ;;  %v723_v2 = vmax.f32 %v387_v60, 0.0  ;;  %v384_v3 = vld [vmem:[%s6892_s0 + $0x560] sm:$0xff]  ;;  %v968_v11 = vpack.c.bf16 %v718_v63, %v716_v62  ;;  %v402_v52 = vld [vmem:[%s6892_s0 + $0x5f0] sm:$0xff] }
 0x134   : > { %3019 = vmatprep.subr.bf16.mxu1 %v959_v6  ;;  %v389_v6 = vld [vmem:[%s6892_s0 + $0x588] sm:$0xff]  ;;  %v720_v12 = vmax.f32 %v384_v3, 0.0  ;;  %v738_v59 = vmax.f32 %v402_v52, 0.0  ;;  %v5110_v3 = vld [vmem:[%s5455_s28 + $0x338] ss:$44 sps:$4 sm:$0xff]  }
 0x135   : > { %v971_v14 = vpack.c.bf16 %v723_v2, %v721_v1  ;;  %v725_v15 = vmax.f32 %v389_v6, 0.0  ;;  %v5097_v53 = vld [vmem:[%s5455_s28 + $0x270] ss:$44 sps:$4 sm:$0xff]   ;;  %v5099_v55 = vld [vmem:[%s5455_s28 + $0x2cc] ss:$44 sps:$4 sm:$0xff]  }
 0x136   : > { %v5101_v56 = vld [vmem:[%s5455_s28 + $0x2e4] ss:$44 sps:$4 sm:$0xff]   ;;  %v5103_v62 = vld [vmem:[%s5455_s28 + $0x2c8] ss:$44 sps:$4 sm:$0xff]   ;;  %v5104_v63 = vld [vmem:[%s5455_s28 + $0x2e0] ss:$44 sps:$4 sm:$0xff]  }
 0x137   : > { %3020 = vmatpush1.bf16.msra.mxu1 %v958_v13  ;;  %v722_v13 = vmax.f32 %v386_v4, 0.0  ;;  %v5107_v1 = vld [vmem:[%s5455_s28 + $0x33c] ss:$44 sps:$4 sm:$0xff]   ;;  %v5109_v2 = vld [vmem:[%s5455_s28 + $0x320] ss:$44 sps:$4 sm:$0xff]  }
 0x138   : > { %3021 = vmatprep.subr.bf16.mxu1 %v961_v16  ;;  %v727_v16 = vmax.f32 %v391_v7, 0.0  ;;  %v5111_v4 = vld [vmem:[%s5455_s28 + $0x37c] ss:$44 sps:$4 sm:$0xff]   ;;  %v5115_v6 = vld [vmem:[%s5455_s28 + $0x378] ss:$44 sps:$4 sm:$0xff]  }
 0x139   : > { %2829 = vmatmul.mubr.bf16.gmra.mrb[12].mxu1 %v5073_v21  ;;  %v970_v21 = vpack.c.bf16 %v722_v13, %v720_v12  ;;  %v5116_v7 = vld [vmem:[%s5455_s28 + $0x390] ss:$44 sps:$4 sm:$0xff]   ;;  %v5123_v12 = vld [vmem:[%s5455_s28 + $0x42c] ss:$44 sps:$4 sm:$0xff]   ;;  %v5175_v46 = vld [vmem:[%s5455_s28 + $0x6e8] ss:$44 sps:$4 sm:$0xff]  }
 0x13a   : > { %3558 = vmatmul.mubr.bf16.gmra.mrb[12].mxu0 %v5074_v24  ;;  %2838 = vmatprep.mubr.bf16.mxu1 %v5075_v25  ;;  %v973_v24 = vpack.c.bf16 %v727_v16, %v725_v15  ;;  %v729_v25 = vmax.f32 %v393_v19, 0.0  ;;  %v5125_v13 = vld [vmem:[%s5455_s28 + $0x444] ss:$44 sps:$4 sm:$0xff]   ;;  %v5128_v15 = vld [vmem:[%s5455_s28 + $0x440] ss:$44 sps:$4 sm:$0xff]  }
 0x13b   : > { %3567 = vmatprep.mubr.bf16.mxu0 %v5077_v26  ;;  %3022 = vmatpush1.bf16.msra.mxu1 %v960_v27  ;;  %v731_v26 = vmax.f32 %v395_v20, 0.0  ;;  %v392_v27 = vld [vmem:[%s6892_s0 + $0x5a0] sm:$0xff]  ;;  %v5169_v42 = vld [vmem:[%s5455_s28 + $0x690] ss:$44 sps:$4 sm:$0xff]  }
 0x13c   : > { %3023 = vmatprep.subr.bf16.mxu1 %v963_v30  ;;  %v397_v30 = vld [vmem:[%s6892_s0 + $0x5c8] sm:$0xff]  ;;  %v728_v36 = vmax.f32 %v392_v27, 0.0  ;;  %v5134_v19 = vld [vmem:[%s5455_s28 + $0x498] ss:$44 sps:$4 sm:$0xff]  }
 0x13d   : > { %v975_v38 = vpack.c.bf16 %v731_v26, %v729_v25  ;;  %v733_v39 = vmax.f32 %v397_v30, 0.0  ;;  %v5129_v16 = vld [vmem:[%s5455_s28 + $0x484] ss:$44 sps:$4 sm:$0xff]   ;;  %v5133_v18 = vld [vmem:[%s5455_s28 + $0x480] ss:$44 sps:$4 sm:$0xff]  }
 0x13e   : > { %v5135_v20 = vld [vmem:[%s5455_s28 + $0x4dc] ss:$44 sps:$4 sm:$0xff]   ;;  %v5143_v25 = vld [vmem:[%s5455_s28 + $0x54c] ss:$44 sps:$4 sm:$0xff]  }
 0x13f   : > { %3024 = vmatpush1.bf16.msra.mxu1 %v962_v37  ;;  %v730_v37 = vmax.f32 %v394_v28, 0.0  ;;  %v5145_v26 = vld [vmem:[%s5455_s28 + $0x530] ss:$44 sps:$4 sm:$0xff]   ;;  %v5146_v27 = vld [vmem:[%s5455_s28 + $0x548] ss:$44 sps:$4 sm:$0xff]  }
 0x140   : > { %3025 = vmatprep.subr.bf16.mxu1 %v965_v40  ;;  %v735_v40 = vmax.f32 %v399_v31, 0.0  ;;  %v5147_v28 = vld [vmem:[%s5455_s28 + $0x58c] ss:$44 sps:$4 sm:$0xff]   ;;  %v5151_v30 = vld [vmem:[%s5455_s28 + $0x588] ss:$44 sps:$4 sm:$0xff]  }
 0x141   : > { %2839 = vmatmul.mubr.bf16.gmra.mrb[16].mxu1 %v5079_v45  ;;  %v974_v45 = vpack.c.bf16 %v730_v37, %v728_v36  ;;  %v5152_v31 = vld [vmem:[%s5455_s28 + $0x5a0] ss:$44 sps:$4 sm:$0xff]   ;;  %v5159_v36 = vld [vmem:[%s5455_s28 + $0x63c] ss:$44 sps:$4 sm:$0xff]  }
 0x142   : > { %3568 = vmatmul.mubr.bf16.gmra.mrb[16].mxu0 %v5080_v48  ;;  %2848 = vmatprep.mubr.bf16.mxu1 %v5081_v49  ;;  %v977_v48 = vpack.c.bf16 %v735_v40, %v733_v39  ;;  %v737_v49 = vmax.f32 %v401_v43, 0.0  ;;  %v5161_v37 = vld [vmem:[%s5455_s28 + $0x654] ss:$44 sps:$4 sm:$0xff]   ;;  %v5164_v39 = vld [vmem:[%s5455_s28 + $0x650] ss:$44 sps:$4 sm:$0xff]  }
 0x143   : > { %3577 = vmatprep.mubr.bf16.mxu0 %v5083_v50  ;;  %3026 = vmatpush1.bf16.msra.mxu1 %v964_v51  ;;  %v739_v50 = vmax.f32 %v403_v44, 0.0  ;;  %v400_v51 = vld [vmem:[%s6892_s0 + $0x5e0] sm:$0xff] }
 0x144   : > { %3027 = vmatprep.subr.bf16.mxu1 %v967_v54  ;;  %v5098_v54 = vld [vmem:[%s5455_s28 + $0x288] ss:$44 sps:$4 sm:$0xff]   ;;  %v736_v58 = vmax.f32 %v400_v51, 0.0  ;;  %v5167_v41 = vld [vmem:[%s5455_s28 + $0x6ac] ss:$44 sps:$4 sm:$0xff]  }
 0x145   : > { %v979_v60 = vpack.c.bf16 %v739_v50, %v737_v49  ;;  %v5165_v40 = vld [vmem:[%s5455_s28 + $0x694] ss:$44 sps:$4 sm:$0xff]   ;;  %v5171_v44 = vld [vmem:[%s5455_s28 + $0x6ec] ss:$44 sps:$4 sm:$0xff]   ;;  %v5346_v49 = vmov 0  }
 0x146   : > { %v5170_v43 = vld [vmem:[%s5455_s28 + $0x6a8] ss:$44 sps:$4 sm:$0xff]   ;;  %v5176_v47 = vld [vmem:[%s5455_s28 + $0x700] ss:$44 sps:$4 sm:$0xff]   ;;  %v5177_v50 = vld [vmem:[%s5455_s28 + $0x10] ss:$44 sps:$4 sm:$0xff]  }
 0x147   : > { %3028 = vmatpush1.bf16.msra.mxu1 %v966_v61  ;;  %v978_v61 = vpack.c.bf16 %v738_v59, %v736_v58  ;;  %v5180_v51 = vld [vmem:[%s5455_s28 + $0x28] ss:$44 sps:$4 sm:$0xff]   ;;  %v5181_v52 = vld [vmem:[%s5455_s28 + $0x6c] ss:$44 sps:$4 sm:$0xff]  }
 0x148   : > { %3029 = vmatprep.subr.bf16.mxu1 %v969_v0  ;;  %v5105_v0 = vld [vmem:[%s5455_s28 + $0x324] ss:$44 sps:$4 sm:$0xff]   ;;  %v5189_v58 = vld [vmem:[%s5455_s28 + $0x11c] ss:$44 sps:$4 sm:$0xff]  }
 0x149   : > { %2849 = vmatmul.mubr.bf16.gmra.mrb[20].mxu1 %v5085_v5  ;;  %v5113_v5 = vld [vmem:[%s5455_s28 + $0x394] ss:$44 sps:$4 sm:$0xff]   ;;  %v5191_v59 = vld [vmem:[%s5455_s28 + $0x118] ss:$44 sps:$4 sm:$0xff]  }
 0x14a   : > { %3578 = vmatmul.mubr.bf16.gmra.mrb[20].mxu0 %v5086_v8  ;;  %2858 = vmatprep.mubr.bf16.mxu1 %v5087_v9  ;;  %v5117_v8 = vld [vmem:[%s5455_s28 + $0x3d4] ss:$44 sps:$4 sm:$0xff]   ;;  %v5119_v9 = vld [vmem:[%s5455_s28 + $0x3ec] ss:$44 sps:$4 sm:$0xff]  }
 0x14b   : > { %3587 = vmatprep.mubr.bf16.mxu0 %v5089_v10  ;;  %3030 = vmatpush1.bf16.msra.mxu1 %v968_v11  ;;  %v5121_v10 = vld [vmem:[%s5455_s28 + $0x3d0] ss:$44 sps:$4 sm:$0xff]   ;;  %v5122_v11 = vld [vmem:[%s5455_s28 + $0x3e8] ss:$44 sps:$4 sm:$0xff]  }
 0x14c   : > { %3031 = vmatprep.subr.bf16.mxu1 %v971_v14  ;;  %v5127_v14 = vld [vmem:[%s5455_s28 + $0x428] ss:$44 sps:$4 sm:$0xff]  }
 0x14f   : > { %3032 = vmatpush1.bf16.msra.mxu1 %v970_v21  ;;  %v5137_v21 = vld [vmem:[%s5455_s28 + $0x4f4] ss:$44 sps:$4 sm:$0xff]  }
 0x150   : > { %3033 = vmatprep.subr.bf16.mxu1 %v973_v24  ;;  %v5141_v24 = vld [vmem:[%s5455_s28 + $0x534] ss:$44 sps:$4 sm:$0xff]  }
 0x151   : > { %2859 = vmatmul.mubr.bf16.gmra.mrb[24].mxu1 %v5091_v29  ;;  %v5149_v29 = vld [vmem:[%s5455_s28 + $0x5a4] ss:$44 sps:$4 sm:$0xff]  }
 0x152   : > { %3588 = vmatmul.mubr.bf16.gmra.mrb[24].mxu0 %v5092_v32  ;;  %2868 = vmatprep.mubr.bf16.mxu1 %v5093_v33  ;;  %v5153_v32 = vld [vmem:[%s5455_s28 + $0x5e4] ss:$44 sps:$4 sm:$0xff]   ;;  %v5155_v33 = vld [vmem:[%s5455_s28 + $0x5fc] ss:$44 sps:$4 sm:$0xff]  }
 0x153   : > { %3597 = vmatprep.mubr.bf16.mxu0 %v5095_v34  ;;  %3034 = vmatpush1.bf16.msra.mxu1 %v972_v35  ;;  %v5157_v34 = vld [vmem:[%s5455_s28 + $0x5e0] ss:$44 sps:$4 sm:$0xff]   ;;  %v5158_v35 = vld [vmem:[%s5455_s28 + $0x5f8] ss:$44 sps:$4 sm:$0xff]  }
 0x154   : > { %3035 = vmatprep.subr.bf16.mxu1 %v975_v38  ;;  %v5163_v38 = vld [vmem:[%s5455_s28 + $0x638] ss:$44 sps:$4 sm:$0xff]  }
 0x157   : > { %3036 = vmatpush1.bf16.msra.mxu1 %v974_v45  ;;  %v5173_v45 = vld [vmem:[%s5455_s28 + $0x704] ss:$44 sps:$4 sm:$0xff]  }
 0x158   : > { %3037 = vmatprep.subr.bf16.mxu1 %v977_v48  ;;  %v5179_v48 = vld [vmem:[%s5455_s28 + $0x14] ss:$44 sps:$4 sm:$0xff]  }
 0x159   : > { %2869 = vmatmul.mubr.bf16.gmra.mrb[28].mxu1 %v5097_v53  ;;  %v5183_v53 = vld [vmem:[%s5455_s28 + $0x68] ss:$44 sps:$4 sm:$0xff]  }
 0x15a   : > { %3598 = vmatmul.mubr.bf16.gmra.mrb[28].mxu0 %v5098_v54  ;;  %2878 = vmatprep.mubr.bf16.mxu1 %v5099_v55  ;;  %v5184_v54 = vld [vmem:[%s5455_s28 + $0x80] ss:$44 sps:$4 sm:$0xff]   ;;  %v5185_v55 = vld [vmem:[%s5455_s28 + $0xc4] ss:$44 sps:$4 sm:$0xff]  }
 0x15b   : > { %3607 = vmatprep.mubr.bf16.mxu0 %v5101_v56  ;;  %3038 = vmatpush1.bf16.msra.mxu1 %v976_v57  ;;  %v5187_v56 = vld [vmem:[%s5455_s28 + $0xc0] ss:$44 sps:$4 sm:$0xff]   ;;  %v5188_v57 = vld [vmem:[%s5455_s28 + $0xd8] ss:$44 sps:$4 sm:$0xff]  }
 0x15c   : > { %3039 = vmatprep.subr.bf16.mxu1 %v979_v60  ;;  %v5192_v60 = vld [vmem:[%s5455_s28 + $0x130] ss:$44 sps:$4 sm:$0xff]  }
 0x15f   : > { %3040 = vmatpush1.bf16.msra.mxu1 %v978_v61  ;;  %v5193_v61 = vld [vmem:[%s5455_s28 + $0x174] ss:$44 sps:$4 sm:$0xff]  }
 0x161   : > { %2879 = vmatmul.mubr.bf16.gmra.mrb[32].mxu1 %v5103_v62  ;;  %v5195_v62 = vld [vmem:[%s5455_s28 + $0x170] ss:$44 sps:$4 sm:$0xff]  }
 0x162   : > { %3608 = vmatmul.mubr.bf16.gmra.mrb[32].mxu0 %v5104_v63  ;;  %2888 = vmatprep.mubr.bf16.mxu1 %v5105_v0  ;;  %v5196_v63 = vld [vmem:[%s5455_s28 + $0x188] ss:$44 sps:$4 sm:$0xff]   ;;  %v5197_v0 = vld [vmem:[%s5455_s28 + $0x1cc] ss:$44 sps:$4 sm:$0xff]  }
 0x163   : > { %3617 = vmatprep.mubr.bf16.mxu0 %v5107_v1  ;;  %v5199_v1 = vld [vmem:[%s5455_s28 + $0x1c8] ss:$44 sps:$4 sm:$0xff]  }
 0x169   : > { %2889 = vmatmul.mubr.bf16.gmra.mrb[36].mxu1 %v5109_v2  ;;  %v5200_v2 = vld [vmem:[%s5455_s28 + $0x1e0] ss:$44 sps:$4 sm:$0xff]  }
 0x16a   : > { %3618 = vmatmul.mubr.bf16.gmra.mrb[36].mxu0 %v5110_v3  ;;  %2898 = vmatprep.mubr.bf16.mxu1 %v5111_v4  ;;  %v5201_v3 = vld [vmem:[%s5455_s28 + $0x224] ss:$44 sps:$4 sm:$0xff]   ;;  %v5203_v4 = vld [vmem:[%s5455_s28 + $0x220] ss:$44 sps:$4 sm:$0xff]  }
 0x16b   : > { %3627 = vmatprep.mubr.bf16.mxu0 %v5113_v5  ;;  %v5204_v5 = vld [vmem:[%s5455_s28 + $0x238] ss:$44 sps:$4 sm:$0xff]  }
 0x171   : > { %2899 = vmatmul.mubr.bf16.gmra.mrb[40].mxu1 %v5115_v6  ;;  %v5205_v6 = vld [vmem:[%s5455_s28 + $0x27c] ss:$44 sps:$4 sm:$0xff]  }
 0x172   : > { %3628 = vmatmul.mubr.bf16.gmra.mrb[40].mxu0 %v5116_v7  ;;  %2908 = vmatprep.mubr.bf16.mxu1 %v5117_v8  ;;  %v5207_v7 = vld [vmem:[%s5455_s28 + $0x278] ss:$44 sps:$4 sm:$0xff]   ;;  %v5208_v8 = vld [vmem:[%s5455_s28 + $0x290] ss:$44 sps:$4 sm:$0xff]  }
 0x173   : > { %3637 = vmatprep.mubr.bf16.mxu0 %v5119_v9  ;;  %v5209_v9 = vld [vmem:[%s5455_s28 + $0x2d4] ss:$44 sps:$4 sm:$0xff]  }
 0x179   : > { %2909 = vmatmul.mubr.bf16.gmra.mrb[44].mxu1 %v5121_v10  ;;  %v5211_v10 = vld [vmem:[%s5455_s28 + $0x2d0] ss:$44 sps:$4 sm:$0xff]  }
 0x17a   : > { %3638 = vmatmul.mubr.bf16.gmra.mrb[44].mxu0 %v5122_v11  ;;  %2918 = vmatprep.mubr.bf16.mxu1 %v5123_v12  ;;  %v5212_v11 = vld [vmem:[%s5455_s28 + $0x2e8] ss:$44 sps:$4 sm:$0xff]   ;;  %v5213_v12 = vld [vmem:[%s5455_s28 + $0x32c] ss:$44 sps:$4 sm:$0xff]  }
 0x17b   : > { %3647 = vmatprep.mubr.bf16.mxu0 %v5125_v13  ;;  %v5215_v13 = vld [vmem:[%s5455_s28 + $0x328] ss:$44 sps:$4 sm:$0xff]  }
 0x181   : > { %2919 = vmatmul.mubr.bf16.gmra.mrb[48].mxu1 %v5127_v14  ;;  %v5216_v14 = vld [vmem:[%s5455_s28 + $0x340] ss:$44 sps:$4 sm:$0xff]  }
 0x182   : > { %3648 = vmatmul.mubr.bf16.gmra.mrb[48].mxu0 %v5128_v15  ;;  %2928 = vmatprep.mubr.bf16.mxu1 %v5129_v16  ;;  %v5217_v15 = vld [vmem:[%s5455_s28 + $0x384] ss:$44 sps:$4 sm:$0xff]   ;;  %v5219_v16 = vld [vmem:[%s5455_s28 + $0x380] ss:$44 sps:$4 sm:$0xff]  }
 0x183   : > { %3657 = vmatprep.mubr.bf16.mxu0 %v5131_v17  ;;  %v5220_v17 = vld [vmem:[%s5455_s28 + $0x398] ss:$44 sps:$4 sm:$0xff]  }
 0x189   : > { %2929 = vmatmul.mubr.bf16.gmra.mrb[52].mxu1 %v5133_v18  ;;  %v5221_v18 = vld [vmem:[%s5455_s28 + $0x3dc] ss:$44 sps:$4 sm:$0xff]  }
 0x18a   : > { %3658 = vmatmul.mubr.bf16.gmra.mrb[52].mxu0 %v5134_v19  ;;  %2938 = vmatprep.mubr.bf16.mxu1 %v5135_v20  ;;  %v5223_v19 = vld [vmem:[%s5455_s28 + $0x3d8] ss:$44 sps:$4 sm:$0xff]   ;;  %v5224_v20 = vld [vmem:[%s5455_s28 + $0x3f0] ss:$44 sps:$4 sm:$0xff]  }
 0x18b   : > { %3667 = vmatprep.mubr.bf16.mxu0 %v5137_v21  ;;  %v5225_v21 = vld [vmem:[%s5455_s28 + $0x434] ss:$44 sps:$4 sm:$0xff]  }
 0x191   : > { %2939 = vmatmul.mubr.bf16.gmra.mrb[56].mxu1 %v5139_v22  ;;  %v5227_v22 = vld [vmem:[%s5455_s28 + $0x430] ss:$44 sps:$4 sm:$0xff]  }
 0x192   : > { %3668 = vmatmul.mubr.bf16.gmra.mrb[56].mxu0 %v5140_v23  ;;  %2948 = vmatprep.mubr.bf16.mxu1 %v5141_v24  ;;  %v5228_v23 = vld [vmem:[%s5455_s28 + $0x448] ss:$44 sps:$4 sm:$0xff]   ;;  %v5229_v24 = vld [vmem:[%s5455_s28 + $0x48c] ss:$44 sps:$4 sm:$0xff]  }
 0x193   : > { %3677 = vmatprep.mubr.bf16.mxu0 %v5143_v25  ;;  %v5231_v25 = vld [vmem:[%s5455_s28 + $0x488] ss:$44 sps:$4 sm:$0xff]  }
 0x199   : > { %2949 = vmatmul.mubr.bf16.gmra.mrb[60].mxu1 %v5145_v26  ;;  %v5232_v26 = vld [vmem:[%s5455_s28 + $0x4a0] ss:$44 sps:$4 sm:$0xff]  }
 0x19a   : > { %3678 = vmatmul.mubr.bf16.gmra.mrb[60].mxu0 %v5146_v27  ;;  %2958 = vmatprep.mubr.bf16.mxu1 %v5147_v28  ;;  %v5233_v27 = vld [vmem:[%s5455_s28 + $0x4e4] ss:$44 sps:$4 sm:$0xff]   ;;  %v5235_v28 = vld [vmem:[%s5455_s28 + $0x4e0] ss:$44 sps:$4 sm:$0xff]  }
 0x19b   : > { %3687 = vmatprep.mubr.bf16.mxu0 %v5149_v29  ;;  %v5236_v29 = vld [vmem:[%s5455_s28 + $0x4f8] ss:$44 sps:$4 sm:$0xff]  }
 0x1a1   : > { %2959 = vmatmul.mubr.bf16.gmra.mrb[64].mxu1 %v5151_v30  ;;  %v5237_v30 = vld [vmem:[%s5455_s28 + $0x53c] ss:$44 sps:$4 sm:$0xff]  }
 0x1a2   : > { %3688 = vmatmul.mubr.bf16.gmra.mrb[64].mxu0 %v5152_v31  ;;  %2968 = vmatprep.mubr.bf16.mxu1 %v5153_v32  ;;  %v5239_v31 = vld [vmem:[%s5455_s28 + $0x538] ss:$44 sps:$4 sm:$0xff]   ;;  %v5240_v32 = vld [vmem:[%s5455_s28 + $0x550] ss:$44 sps:$4 sm:$0xff]  }
 0x1a3   : > { %3697 = vmatprep.mubr.bf16.mxu0 %v5155_v33  ;;  %v5241_v33 = vld [vmem:[%s5455_s28 + $0x594] ss:$44 sps:$4 sm:$0xff]  }
 0x1a9   : > { %2969 = vmatmul.mubr.bf16.gmra.mrb[68].mxu1 %v5157_v34  ;;  %v5243_v34 = vld [vmem:[%s5455_s28 + $0x590] ss:$44 sps:$4 sm:$0xff]  }
 0x1aa   : > { %3698 = vmatmul.mubr.bf16.gmra.mrb[68].mxu0 %v5158_v35  ;;  %2978 = vmatprep.mubr.bf16.mxu1 %v5159_v36  ;;  %v5244_v35 = vld [vmem:[%s5455_s28 + $0x5a8] ss:$44 sps:$4 sm:$0xff]   ;;  %v5245_v36 = vld [vmem:[%s5455_s28 + $0x5ec] ss:$44 sps:$4 sm:$0xff]  }
 0x1ab   : > { %3707 = vmatprep.mubr.bf16.mxu0 %v5161_v37  ;;  %v5247_v37 = vld [vmem:[%s5455_s28 + $0x5e8] ss:$44 sps:$4 sm:$0xff]  }
 0x1b1   : > { %2979 = vmatmul.mubr.bf16.gmra.mrb[72].mxu1 %v5163_v38  ;;  %v5248_v38 = vld [vmem:[%s5455_s28 + $0x600] ss:$44 sps:$4 sm:$0xff]  }
 0x1b2   : > { %3708 = vmatmul.mubr.bf16.gmra.mrb[72].mxu0 %v5164_v39  ;;  %2988 = vmatprep.mubr.bf16.mxu1 %v5165_v40  ;;  %v5249_v39 = vld [vmem:[%s5455_s28 + $0x644] ss:$44 sps:$4 sm:$0xff]   ;;  %v5251_v40 = vld [vmem:[%s5455_s28 + $0x640] ss:$44 sps:$4 sm:$0xff]  }
 0x1b3   : > { %3717 = vmatprep.mubr.bf16.mxu0 %v5167_v41  ;;  %v5252_v41 = vld [vmem:[%s5455_s28 + $0x658] ss:$44 sps:$4 sm:$0xff]  }
 0x1b9   : > { %2989 = vmatmul.mubr.bf16.gmra.mrb[76].mxu1 %v5169_v42  ;;  %v5253_v42 = vld [vmem:[%s5455_s28 + $0x69c] ss:$44 sps:$4 sm:$0xff]  }
 0x1ba   : > { %3718 = vmatmul.mubr.bf16.gmra.mrb[76].mxu0 %v5170_v43  ;;  %2998 = vmatprep.mubr.bf16.mxu1 %v5171_v44  ;;  %v5255_v43 = vld [vmem:[%s5455_s28 + $0x698] ss:$44 sps:$4 sm:$0xff]   ;;  %v5256_v44 = vld [vmem:[%s5455_s28 + $0x6b0] ss:$44 sps:$4 sm:$0xff]  }
 0x1bb   : > { %3727 = vmatprep.mubr.bf16.mxu0 %v5173_v45  ;;  %v5257_v45 = vld [vmem:[%s5455_s28 + $0x6f4] ss:$44 sps:$4 sm:$0xff]  }
 0x1c1   : > { %2999 = vmatmul.mubr.bf16.gmra.mrb[80].mxu1 %v5175_v46  ;;  %v5259_v46 = vld [vmem:[%s5455_s28 + $0x6f0] ss:$44 sps:$4 sm:$0xff]  }
 0x1c2   : > { %3728 = vmatmul.mubr.bf16.gmra.mrb[80].mxu0 %v5176_v47  ;;  %3041 = vmatprep.mubr.bf16.mxu1 %v5179_v48  ;;  %v5260_v47 = vld [vmem:[%s5455_s28 + $0x708] ss:$44 sps:$4 sm:$0xff]  }
 0x1c3   : > { %3770 = vmatprep.mubr.bf16.mxu0 %v5346_v49 }
 0x1c9   : > { %3042 = vmatmul.mubr.bf16.vlgmr.msra.gmra.mrb[0].mxu1 %v5177_v50 }
 0x1ca   : > { %4419 = vmatmul.mubr.msk.bf16.vlgmr.msra.gmra.mrb[0].mxu0 %vm2459_vm0, %v5180_v51  ;;  %3051 = vmatprep.mubr.bf16.mxu1 %v5181_v52 }
 0x1cb   : > { %3780 = vmatprep.mubr.bf16.mxu0 %v5346_v49 }
 0x1d1   : > { %3052 = vmatmul.mubr.bf16.gmra.mrb[4].mxu1 %v5183_v53 }
 0x1d2   : > { %4420 = vmatmul.mubr.msk.bf16.gmra.mrb[4].mxu0 %vm2459_vm0, %v5184_v54  ;;  %3061 = vmatprep.mubr.bf16.mxu1 %v5185_v55 }
 0x1d3   : > { %3790 = vmatprep.mubr.bf16.mxu0 %v5346_v49 }
 0x1d9   : > { %3062 = vmatmul.mubr.bf16.gmra.mrb[8].mxu1 %v5187_v56 }
 0x1da   : > { %4421 = vmatmul.mubr.msk.bf16.gmra.mrb[8].mxu0 %vm2459_vm0, %v5188_v57  ;;  %3071 = vmatprep.mubr.bf16.mxu1 %v5189_v58 }
 0x1db   : > { %3800 = vmatprep.mubr.bf16.mxu0 %v5346_v49 }
 0x1e1   : > { %3072 = vmatmul.mubr.bf16.gmra.mrb[12].mxu1 %v5191_v59 }
 0x1e2   : > { %4422 = vmatmul.mubr.msk.bf16.gmra.mrb[12].mxu0 %vm2459_vm0, %v5192_v60  ;;  %3081 = vmatprep.mubr.bf16.mxu1 %v5193_v61 }
 0x1e3   : > { %3810 = vmatprep.mubr.bf16.mxu0 %v5346_v49 }
 0x1e9   : > { %3082 = vmatmul.mubr.bf16.gmra.mrb[16].mxu1 %v5195_v62 }
 0x1ea   : > { %4423 = vmatmul.mubr.msk.bf16.gmra.mrb[16].mxu0 %vm2459_vm0, %v5196_v63  ;;  %3091 = vmatprep.mubr.bf16.mxu1 %v5197_v0 }
 0x1eb   : > { %3820 = vmatprep.mubr.bf16.mxu0 %v5346_v49 }
 0x1f1   : > { %3092 = vmatmul.mubr.bf16.gmra.mrb[20].mxu1 %v5199_v1 }
 0x1f2   : > { %4424 = vmatmul.mubr.msk.bf16.gmra.mrb[20].mxu0 %vm2459_vm0, %v5200_v2  ;;  %3101 = vmatprep.mubr.bf16.mxu1 %v5201_v3 }
 0x1f3   : > { %3830 = vmatprep.mubr.bf16.mxu0 %v5346_v49 }
 0x1f9   : > { %3102 = vmatmul.mubr.bf16.gmra.mrb[24].mxu1 %v5203_v4 }
 0x1fa   : > { %4425 = vmatmul.mubr.msk.bf16.gmra.mrb[24].mxu0 %vm2459_vm0, %v5204_v5  ;;  %3111 = vmatprep.mubr.bf16.mxu1 %v5205_v6 }
 0x1fb   : > { %3840 = vmatprep.mubr.bf16.mxu0 %v5346_v49 }
 0x201   : > { %3112 = vmatmul.mubr.bf16.gmra.mrb[28].mxu1 %v5207_v7 }
 0x202   : > { %4426 = vmatmul.mubr.msk.bf16.gmra.mrb[28].mxu0 %vm2459_vm0, %v5208_v8  ;;  %3121 = vmatprep.mubr.bf16.mxu1 %v5209_v9 }
 0x203   : > { %3850 = vmatprep.mubr.bf16.mxu0 %v5346_v49 }
 0x209   : > { %3122 = vmatmul.mubr.bf16.gmra.mrb[32].mxu1 %v5211_v10 }
 0x20a   : > { %4427 = vmatmul.mubr.msk.bf16.gmra.mrb[32].mxu0 %vm2459_vm0, %v5212_v11  ;;  %3131 = vmatprep.mubr.bf16.mxu1 %v5213_v12 }
 0x20b   : > { %3860 = vmatprep.mubr.bf16.mxu0 %v5346_v49 }
 0x211   : > { %3132 = vmatmul.mubr.bf16.gmra.mrb[36].mxu1 %v5215_v13 }
 0x212   : > { %4428 = vmatmul.mubr.msk.bf16.gmra.mrb[36].mxu0 %vm2459_vm0, %v5216_v14  ;;  %3141 = vmatprep.mubr.bf16.mxu1 %v5217_v15 }
 0x213   : > { %3870 = vmatprep.mubr.bf16.mxu0 %v5346_v49 }
 0x219   : > { %3142 = vmatmul.mubr.bf16.gmra.mrb[40].mxu1 %v5219_v16 }
 0x21a   : > { %4429 = vmatmul.mubr.msk.bf16.gmra.mrb[40].mxu0 %vm2459_vm0, %v5220_v17  ;;  %3151 = vmatprep.mubr.bf16.mxu1 %v5221_v18 }
 0x21b   : > { %3880 = vmatprep.mubr.bf16.mxu0 %v5346_v49 }
 0x221   : > { %3152 = vmatmul.mubr.bf16.gmra.mrb[44].mxu1 %v5223_v19 }
 0x222   : > { %4430 = vmatmul.mubr.msk.bf16.gmra.mrb[44].mxu0 %vm2459_vm0, %v5224_v20  ;;  %3161 = vmatprep.mubr.bf16.mxu1 %v5225_v21 }
 0x223   : > { %3890 = vmatprep.mubr.bf16.mxu0 %v5346_v49 }
 0x229   : > { %3162 = vmatmul.mubr.bf16.gmra.mrb[48].mxu1 %v5227_v22 }
 0x22a   : > { %4431 = vmatmul.mubr.msk.bf16.gmra.mrb[48].mxu0 %vm2459_vm0, %v5228_v23  ;;  %3171 = vmatprep.mubr.bf16.mxu1 %v5229_v24 }
 0x22b   : > { %3900 = vmatprep.mubr.bf16.mxu0 %v5346_v49 }
 0x231   : > { %3172 = vmatmul.mubr.bf16.gmra.mrb[52].mxu1 %v5231_v25 }
 0x232   : > { %4432 = vmatmul.mubr.msk.bf16.gmra.mrb[52].mxu0 %vm2459_vm0, %v5232_v26  ;;  %3181 = vmatprep.mubr.bf16.mxu1 %v5233_v27 }
 0x233   : > { %3910 = vmatprep.mubr.bf16.mxu0 %v5346_v49 }
 0x239   : > { %3182 = vmatmul.mubr.bf16.gmra.mrb[56].mxu1 %v5235_v28 }
 0x23a   : > { %4433 = vmatmul.mubr.msk.bf16.gmra.mrb[56].mxu0 %vm2459_vm0, %v5236_v29  ;;  %3191 = vmatprep.mubr.bf16.mxu1 %v5237_v30 }
 0x23b   : > { %3920 = vmatprep.mubr.bf16.mxu0 %v5346_v49 }
 0x241   : > { %3192 = vmatmul.mubr.bf16.gmra.mrb[60].mxu1 %v5239_v31 }
 0x242   : > { %4434 = vmatmul.mubr.msk.bf16.gmra.mrb[60].mxu0 %vm2459_vm0, %v5240_v32  ;;  %3201 = vmatprep.mubr.bf16.mxu1 %v5241_v33 }
 0x243   : > { %3930 = vmatprep.mubr.bf16.mxu0 %v5346_v49 }
 0x249   : > { %3202 = vmatmul.mubr.bf16.gmra.mrb[64].mxu1 %v5243_v34 }
 0x24a   : > { %4435 = vmatmul.mubr.msk.bf16.gmra.mrb[64].mxu0 %vm2459_vm0, %v5244_v35  ;;  %3211 = vmatprep.mubr.bf16.mxu1 %v5245_v36 }
 0x24b   : > { %3940 = vmatprep.mubr.bf16.mxu0 %v5346_v49 }
 0x251   : > { %3212 = vmatmul.mubr.bf16.gmra.mrb[68].mxu1 %v5247_v37 }
 0x252   : > { %4436 = vmatmul.mubr.msk.bf16.gmra.mrb[68].mxu0 %vm2459_vm0, %v5248_v38  ;;  %3221 = vmatprep.mubr.bf16.mxu1 %v5249_v39 }
 0x253   : > { %3950 = vmatprep.mubr.bf16.mxu0 %v5346_v49 }
 0x259   : > { %3222 = vmatmul.mubr.bf16.gmra.mrb[72].mxu1 %v5251_v40 }
 0x25a   : > { %4437 = vmatmul.mubr.msk.bf16.gmra.mrb[72].mxu0 %vm2459_vm0, %v5252_v41  ;;  %3231 = vmatprep.mubr.bf16.mxu1 %v5253_v42 }
 0x25b   : > { %3960 = vmatprep.mubr.bf16.mxu0 %v5346_v49 }
 0x261   : > { %3232 = vmatmul.mubr.bf16.gmra.mrb[76].mxu1 %v5255_v43 }
 0x262   : > { %4438 = vmatmul.mubr.msk.bf16.gmra.mrb[76].mxu0 %vm2459_vm0, %v5256_v44  ;;  %3241 = vmatprep.mubr.bf16.mxu1 %v5257_v45 }
 0x263   : > { %3970 = vmatprep.mubr.bf16.mxu0 %v5346_v49 }
 0x269   : > { %3242 = vmatmul.mubr.bf16.gmra.mrb[80].mxu1 %v5259_v46 }
 0x26a   : > { %4439 = vmatmul.mubr.msk.bf16.gmra.mrb[80].mxu0 %vm2459_vm0, %v5260_v47 }
 0x29c   : > { %v3043_v48 = vpop.f32.mrb[0].mxu1 }
 0x29d   : > { %v3772_v49 = vpop.f32.mrb[0].mxu0  ;;  %v3045_v50 = vpop.f32.mrb[1].mxu1 }
 0x29e   : > { %v4443_v51 = vadd.f32 %v3772_v49, %v3043_v48  ;;  %v3774_v52 = vpop.f32.mrb[1].mxu0  ;;  %v3047_v53 = vpop.f32.mrb[2].mxu1 }
 0x29f   : > { %v4444_v54 = vadd.f32 %v3774_v52, %v3045_v50  ;;  %v3776_v55 = vpop.f32.mrb[2].mxu0  ;;  %v3049_v56 = vpop.f32.mrb[3].mxu1 }
 0x2a0   : > { %3981 = vst [vmem:[%s6746_s22] sm:$0xff] %v4443_v51  ;;  %v4445_v57 = vadd.f32 %v3776_v55, %v3047_v53  ;;  %v3778_v58 = vpop.f32.mrb[3].mxu0 }
 0x2a1   : > { %3983 = vst.msk [vmem:[%s6746_s22 + $0x8] sm:$0xff] %vm3982_vm1, %v4444_v54  ;;  %v4446_v59 = vadd.f32 %v3778_v58, %v3049_v56 }
 0x2a2   : > { %3984 = vst [vmem:[%s6746_s22 + $0x10] sm:$0xff] %v4445_v57 }
 0x2a3   : > { %3985 = vst.msk [vmem:[%s6746_s22 + $0x18] sm:$0xff] %vm3982_vm1, %v4446_v59 }
 0x2a4   : > { %v3053_v60 = vpop.f32.mrb[4].mxu1 }
 0x2a5   : > { %v3782_v61 = vpop.f32.mrb[4].mxu0  ;;  %v3055_v62 = vpop.f32.mrb[5].mxu1 }
 0x2a6   : > { %v4447_v63 = vadd.f32 %v3782_v61, %v3053_v60  ;;  %v3784_v0 = vpop.f32.mrb[5].mxu0  ;;  %v3057_v1 = vpop.f32.mrb[6].mxu1 }
 0x2a7   : > { %v4448_v2 = vadd.f32 %v3784_v0, %v3055_v62  ;;  %v3786_v3 = vpop.f32.mrb[6].mxu0  ;;  %v3059_v4 = vpop.f32.mrb[7].mxu1 }
 0x2a8   : > { %3986 = vst [vmem:[%s6746_s22 + $0x20] sm:$0xff] %v4447_v63  ;;  %v4449_v5 = vadd.f32 %v3786_v3, %v3057_v1  ;;  %v3788_v6 = vpop.f32.mrb[7].mxu0 }
 0x2a9   : > { %3987 = vst.msk [vmem:[%s6746_s22 + $0x28] sm:$0xff] %vm3982_vm1, %v4448_v2  ;;  %v4450_v7 = vadd.f32 %v3788_v6, %v3059_v4 }
 0x2aa   : > { %3988 = vst [vmem:[%s6746_s22 + $0x30] sm:$0xff] %v4449_v5 }
 0x2ab   : > { %3989 = vst.msk [vmem:[%s6746_s22 + $0x38] sm:$0xff] %vm3982_vm1, %v4450_v7 }
 0x2ac   : > { %v3063_v8 = vpop.f32.mrb[8].mxu1 }
 0x2ad   : > { %v3792_v9 = vpop.f32.mrb[8].mxu0  ;;  %v3065_v10 = vpop.f32.mrb[9].mxu1 }
 0x2ae   : > { %v4451_v11 = vadd.f32 %v3792_v9, %v3063_v8  ;;  %v3794_v12 = vpop.f32.mrb[9].mxu0  ;;  %v3067_v13 = vpop.f32.mrb[10].mxu1 }
 0x2af   : > { %v4452_v14 = vadd.f32 %v3794_v12, %v3065_v10  ;;  %v3796_v15 = vpop.f32.mrb[10].mxu0  ;;  %v3069_v16 = vpop.f32.mrb[11].mxu1 }
 0x2b0   : > { %3990 = vst [vmem:[%s6746_s22 + $0x40] sm:$0xff] %v4451_v11  ;;  %v4453_v17 = vadd.f32 %v3796_v15, %v3067_v13  ;;  %v3798_v18 = vpop.f32.mrb[11].mxu0 }
 0x2b1   : > { %3991 = vst.msk [vmem:[%s6746_s22 + $0x48] sm:$0xff] %vm3982_vm1, %v4452_v14  ;;  %v4454_v19 = vadd.f32 %v3798_v18, %v3069_v16 }
 0x2b2   : > { %3992 = vst [vmem:[%s6746_s22 + $0x50] sm:$0xff] %v4453_v17 }
 0x2b3   : > { %3993 = vst.msk [vmem:[%s6746_s22 + $0x58] sm:$0xff] %vm3982_vm1, %v4454_v19 }
 0x2b4   : > { %v3073_v20 = vpop.f32.mrb[12].mxu1 }
 0x2b5   : > { %v3802_v21 = vpop.f32.mrb[12].mxu0  ;;  %v3075_v22 = vpop.f32.mrb[13].mxu1 }
 0x2b6   : > { %v4455_v23 = vadd.f32 %v3802_v21, %v3073_v20  ;;  %v3804_v24 = vpop.f32.mrb[13].mxu0  ;;  %v3077_v25 = vpop.f32.mrb[14].mxu1 }
 0x2b7   : > { %v4456_v26 = vadd.f32 %v3804_v24, %v3075_v22  ;;  %v3806_v27 = vpop.f32.mrb[14].mxu0  ;;  %v3079_v28 = vpop.f32.mrb[15].mxu1 }
 0x2b8   : > { %3994 = vst [vmem:[%s6746_s22 + $0x60] sm:$0xff] %v4455_v23  ;;  %v4457_v29 = vadd.f32 %v3806_v27, %v3077_v25  ;;  %v3808_v30 = vpop.f32.mrb[15].mxu0 }
 0x2b9   : > { %3995 = vst.msk [vmem:[%s6746_s22 + $0x68] sm:$0xff] %vm3982_vm1, %v4456_v26  ;;  %v4458_v31 = vadd.f32 %v3808_v30, %v3079_v28 }
 0x2ba   : > { %3996 = vst [vmem:[%s6746_s22 + $0x70] sm:$0xff] %v4457_v29 }
 0x2bb   : > { %3997 = vst.msk [vmem:[%s6746_s22 + $0x78] sm:$0xff] %vm3982_vm1, %v4458_v31 }
 0x2bc   : > { %v3083_v32 = vpop.f32.mrb[16].mxu1 }
 0x2bd   : > { %v3812_v33 = vpop.f32.mrb[16].mxu0  ;;  %v3085_v34 = vpop.f32.mrb[17].mxu1 }
 0x2be   : > { %v4459_v35 = vadd.f32 %v3812_v33, %v3083_v32  ;;  %v3814_v36 = vpop.f32.mrb[17].mxu0  ;;  %v3087_v37 = vpop.f32.mrb[18].mxu1 }
 0x2bf   : > { %v4460_v38 = vadd.f32 %v3814_v36, %v3085_v34  ;;  %v3816_v39 = vpop.f32.mrb[18].mxu0  ;;  %v3089_v40 = vpop.f32.mrb[19].mxu1 }
 0x2c0   : > { %3998 = vst [vmem:[%s6746_s22 + $0x80] sm:$0xff] %v4459_v35  ;;  %v4461_v41 = vadd.f32 %v3816_v39, %v3087_v37  ;;  %v3818_v42 = vpop.f32.mrb[19].mxu0 }
 0x2c1   : > { %3999 = vst.msk [vmem:[%s6746_s22 + $0x88] sm:$0xff] %vm3982_vm1, %v4460_v38  ;;  %v4462_v43 = vadd.f32 %v3818_v42, %v3089_v40 }
 0x2c2   : > { %4000 = vst [vmem:[%s6746_s22 + $0x90] sm:$0xff] %v4461_v41 }
 0x2c3   : > { %4001 = vst.msk [vmem:[%s6746_s22 + $0x98] sm:$0xff] %vm3982_vm1, %v4462_v43 }
 0x2c4   : > { %v3093_v44 = vpop.f32.mrb[20].mxu1 }
 0x2c5   : > { %v3822_v45 = vpop.f32.mrb[20].mxu0  ;;  %v3095_v46 = vpop.f32.mrb[21].mxu1 }
 0x2c6   : > { %v4463_v47 = vadd.f32 %v3822_v45, %v3093_v44  ;;  %v3824_v48 = vpop.f32.mrb[21].mxu0  ;;  %v3097_v49 = vpop.f32.mrb[22].mxu1 }
 0x2c7   : > { %v4464_v50 = vadd.f32 %v3824_v48, %v3095_v46  ;;  %v3826_v51 = vpop.f32.mrb[22].mxu0  ;;  %v3099_v52 = vpop.f32.mrb[23].mxu1 }
 0x2c8   : > { %4002 = vst [vmem:[%s6746_s22 + $0xa0] sm:$0xff] %v4463_v47  ;;  %v4465_v53 = vadd.f32 %v3826_v51, %v3097_v49  ;;  %v3828_v54 = vpop.f32.mrb[23].mxu0 }
 0x2c9   : > { %4003 = vst.msk [vmem:[%s6746_s22 + $0xa8] sm:$0xff] %vm3982_vm1, %v4464_v50  ;;  %v4466_v55 = vadd.f32 %v3828_v54, %v3099_v52 }
 0x2ca   : > { %4004 = vst [vmem:[%s6746_s22 + $0xb0] sm:$0xff] %v4465_v53 }
 0x2cb   : > { %4005 = vst.msk [vmem:[%s6746_s22 + $0xb8] sm:$0xff] %vm3982_vm1, %v4466_v55 }
 0x2cc   : > { %v3103_v56 = vpop.f32.mrb[24].mxu1 }
 0x2cd   : > { %v3832_v57 = vpop.f32.mrb[24].mxu0  ;;  %v3105_v58 = vpop.f32.mrb[25].mxu1 }
 0x2ce   : > { %v4467_v59 = vadd.f32 %v3832_v57, %v3103_v56  ;;  %v3834_v60 = vpop.f32.mrb[25].mxu0  ;;  %v3107_v61 = vpop.f32.mrb[26].mxu1 }
 0x2cf   : > { %v4468_v62 = vadd.f32 %v3834_v60, %v3105_v58  ;;  %v3836_v63 = vpop.f32.mrb[26].mxu0  ;;  %v3109_v0 = vpop.f32.mrb[27].mxu1 }
 0x2d0   : > { %4006 = vst [vmem:[%s6746_s22 + $0xc0] sm:$0xff] %v4467_v59  ;;  %v4469_v1 = vadd.f32 %v3836_v63, %v3107_v61  ;;  %v3838_v2 = vpop.f32.mrb[27].mxu0 }
 0x2d1   : > { %4007 = vst.msk [vmem:[%s6746_s22 + $0xc8] sm:$0xff] %vm3982_vm1, %v4468_v62  ;;  %v4470_v3 = vadd.f32 %v3838_v2, %v3109_v0 }
 0x2d2   : > { %4008 = vst [vmem:[%s6746_s22 + $0xd0] sm:$0xff] %v4469_v1 }
 0x2d3   : > { %4009 = vst.msk [vmem:[%s6746_s22 + $0xd8] sm:$0xff] %vm3982_vm1, %v4470_v3 }
 0x2d4   : > { %v3113_v4 = vpop.f32.mrb[28].mxu1 }
 0x2d5   : > { %v3842_v5 = vpop.f32.mrb[28].mxu0  ;;  %v3115_v6 = vpop.f32.mrb[29].mxu1 }
 0x2d6   : > { %v4471_v7 = vadd.f32 %v3842_v5, %v3113_v4  ;;  %v3844_v8 = vpop.f32.mrb[29].mxu0  ;;  %v3117_v9 = vpop.f32.mrb[30].mxu1 }
 0x2d7   : > { %v4472_v10 = vadd.f32 %v3844_v8, %v3115_v6  ;;  %v3846_v11 = vpop.f32.mrb[30].mxu0  ;;  %v3119_v12 = vpop.f32.mrb[31].mxu1 }
 0x2d8   : > { %4010 = vst [vmem:[%s6746_s22 + $0xe0] sm:$0xff] %v4471_v7  ;;  %v4473_v13 = vadd.f32 %v3846_v11, %v3117_v9  ;;  %v3848_v14 = vpop.f32.mrb[31].mxu0 }
 0x2d9   : > { %4011 = vst.msk [vmem:[%s6746_s22 + $0xe8] sm:$0xff] %vm3982_vm1, %v4472_v10  ;;  %v4474_v15 = vadd.f32 %v3848_v14, %v3119_v12 }
 0x2da   : > { %4012 = vst [vmem:[%s6746_s22 + $0xf0] sm:$0xff] %v4473_v13 }
 0x2db   : > { %4013 = vst.msk [vmem:[%s6746_s22 + $0xf8] sm:$0xff] %vm3982_vm1, %v4474_v15 }
 0x2dc   : > { %v3123_v16 = vpop.f32.mrb[32].mxu1 }
 0x2dd   : > { %v3852_v17 = vpop.f32.mrb[32].mxu0  ;;  %v3125_v18 = vpop.f32.mrb[33].mxu1 }
 0x2de   : > { %v4475_v19 = vadd.f32 %v3852_v17, %v3123_v16  ;;  %v3854_v20 = vpop.f32.mrb[33].mxu0  ;;  %v3127_v21 = vpop.f32.mrb[34].mxu1 }
 0x2df   : > { %v4476_v22 = vadd.f32 %v3854_v20, %v3125_v18  ;;  %v3856_v23 = vpop.f32.mrb[34].mxu0  ;;  %v3129_v24 = vpop.f32.mrb[35].mxu1 }
 0x2e0   : > { %4014 = vst [vmem:[%s6746_s22 + $0x100] sm:$0xff] %v4475_v19  ;;  %v4477_v25 = vadd.f32 %v3856_v23, %v3127_v21  ;;  %v3858_v26 = vpop.f32.mrb[35].mxu0 }
 0x2e1   : > { %4015 = vst.msk [vmem:[%s6746_s22 + $0x108] sm:$0xff] %vm3982_vm1, %v4476_v22  ;;  %v4478_v27 = vadd.f32 %v3858_v26, %v3129_v24 }
 0x2e2   : > { %4016 = vst [vmem:[%s6746_s22 + $0x110] sm:$0xff] %v4477_v25 }
 0x2e3   : > { %4017 = vst.msk [vmem:[%s6746_s22 + $0x118] sm:$0xff] %vm3982_vm1, %v4478_v27 }
 0x2e4   : > { %v3133_v28 = vpop.f32.mrb[36].mxu1 }
 0x2e5   : > { %v3862_v29 = vpop.f32.mrb[36].mxu0  ;;  %v3135_v30 = vpop.f32.mrb[37].mxu1 }
 0x2e6   : > { %v4479_v31 = vadd.f32 %v3862_v29, %v3133_v28  ;;  %v3864_v32 = vpop.f32.mrb[37].mxu0  ;;  %v3137_v33 = vpop.f32.mrb[38].mxu1 }
 0x2e7   : > { %v4480_v34 = vadd.f32 %v3864_v32, %v3135_v30  ;;  %v3866_v35 = vpop.f32.mrb[38].mxu0  ;;  %v3139_v36 = vpop.f32.mrb[39].mxu1 }
 0x2e8   : > { %4018 = vst [vmem:[%s6746_s22 + $0x120] sm:$0xff] %v4479_v31  ;;  %v4481_v37 = vadd.f32 %v3866_v35, %v3137_v33  ;;  %v3868_v38 = vpop.f32.mrb[39].mxu0 }
 0x2e9   : > { %4019 = vst.msk [vmem:[%s6746_s22 + $0x128] sm:$0xff] %vm3982_vm1, %v4480_v34  ;;  %v4482_v39 = vadd.f32 %v3868_v38, %v3139_v36 }
 0x2ea   : > { %4020 = vst [vmem:[%s6746_s22 + $0x130] sm:$0xff] %v4481_v37 }
 0x2eb   : > { %4021 = vst.msk [vmem:[%s6746_s22 + $0x138] sm:$0xff] %vm3982_vm1, %v4482_v39 }
 0x2ec   : > { %v3143_v40 = vpop.f32.mrb[40].mxu1 }
 0x2ed   : > { %v3872_v41 = vpop.f32.mrb[40].mxu0  ;;  %v3145_v42 = vpop.f32.mrb[41].mxu1 }
 0x2ee   : > { %v4483_v43 = vadd.f32 %v3872_v41, %v3143_v40  ;;  %v3874_v44 = vpop.f32.mrb[41].mxu0  ;;  %v3147_v45 = vpop.f32.mrb[42].mxu1 }
 0x2ef   : > { %v4484_v46 = vadd.f32 %v3874_v44, %v3145_v42  ;;  %v3876_v47 = vpop.f32.mrb[42].mxu0  ;;  %v3149_v48 = vpop.f32.mrb[43].mxu1 }
 0x2f0   : > { %4022 = vst [vmem:[%s6746_s22 + $0x140] sm:$0xff] %v4483_v43  ;;  %v4485_v49 = vadd.f32 %v3876_v47, %v3147_v45  ;;  %v3878_v50 = vpop.f32.mrb[43].mxu0 }
 0x2f1   : > { %4023 = vst.msk [vmem:[%s6746_s22 + $0x148] sm:$0xff] %vm3982_vm1, %v4484_v46  ;;  %v4486_v51 = vadd.f32 %v3878_v50, %v3149_v48 }
 0x2f2   : > { %4024 = vst [vmem:[%s6746_s22 + $0x150] sm:$0xff] %v4485_v49 }
 0x2f3   : > { %4025 = vst.msk [vmem:[%s6746_s22 + $0x158] sm:$0xff] %vm3982_vm1, %v4486_v51 }
 0x2f4   : > { %v3153_v52 = vpop.f32.mrb[44].mxu1 }
 0x2f5   : > { %v3882_v53 = vpop.f32.mrb[44].mxu0  ;;  %v3155_v54 = vpop.f32.mrb[45].mxu1 }
 0x2f6   : > { %v4487_v55 = vadd.f32 %v3882_v53, %v3153_v52  ;;  %v3884_v56 = vpop.f32.mrb[45].mxu0  ;;  %v3157_v57 = vpop.f32.mrb[46].mxu1 }
 0x2f7   : > { %v4488_v58 = vadd.f32 %v3884_v56, %v3155_v54  ;;  %v3886_v59 = vpop.f32.mrb[46].mxu0  ;;  %v3159_v60 = vpop.f32.mrb[47].mxu1 }
 0x2f8   : > { %4026 = vst [vmem:[%s6746_s22 + $0x160] sm:$0xff] %v4487_v55  ;;  %v4489_v61 = vadd.f32 %v3886_v59, %v3157_v57  ;;  %v3888_v62 = vpop.f32.mrb[47].mxu0 }
 0x2f9   : > { %4027 = vst.msk [vmem:[%s6746_s22 + $0x168] sm:$0xff] %vm3982_vm1, %v4488_v58  ;;  %v4490_v63 = vadd.f32 %v3888_v62, %v3159_v60 }
 0x2fa   : > { %4028 = vst [vmem:[%s6746_s22 + $0x170] sm:$0xff] %v4489_v61 }
 0x2fb   : > { %4029 = vst.msk [vmem:[%s6746_s22 + $0x178] sm:$0xff] %vm3982_vm1, %v4490_v63 }
 0x2fc   : > { %v3163_v0 = vpop.f32.mrb[48].mxu1 }
 0x2fd   : > { %v3892_v1 = vpop.f32.mrb[48].mxu0  ;;  %v3165_v2 = vpop.f32.mrb[49].mxu1 }
 0x2fe   : > { %v4491_v3 = vadd.f32 %v3892_v1, %v3163_v0  ;;  %v3894_v4 = vpop.f32.mrb[49].mxu0  ;;  %v3167_v5 = vpop.f32.mrb[50].mxu1 }
 0x2ff   : > { %v4492_v6 = vadd.f32 %v3894_v4, %v3165_v2  ;;  %v3896_v7 = vpop.f32.mrb[50].mxu0  ;;  %v3169_v8 = vpop.f32.mrb[51].mxu1 }
 0x300   : > { %4030 = vst [vmem:[%s6746_s22 + $0x180] sm:$0xff] %v4491_v3  ;;  %v4493_v9 = vadd.f32 %v3896_v7, %v3167_v5  ;;  %v3898_v10 = vpop.f32.mrb[51].mxu0 }
 0x301   : > { %4031 = vst.msk [vmem:[%s6746_s22 + $0x188] sm:$0xff] %vm3982_vm1, %v4492_v6  ;;  %v4494_v11 = vadd.f32 %v3898_v10, %v3169_v8 }
 0x302   : > { %4032 = vst [vmem:[%s6746_s22 + $0x190] sm:$0xff] %v4493_v9 }
 0x303   : > { %4033 = vst.msk [vmem:[%s6746_s22 + $0x198] sm:$0xff] %vm3982_vm1, %v4494_v11 }
 0x304   : > { %v3173_v12 = vpop.f32.mrb[52].mxu1 }
 0x305   : > { %v3902_v13 = vpop.f32.mrb[52].mxu0  ;;  %v3175_v14 = vpop.f32.mrb[53].mxu1 }
 0x306   : > { %v4495_v15 = vadd.f32 %v3902_v13, %v3173_v12  ;;  %v3904_v16 = vpop.f32.mrb[53].mxu0  ;;  %v3177_v17 = vpop.f32.mrb[54].mxu1 }
 0x307   : > { %v4496_v18 = vadd.f32 %v3904_v16, %v3175_v14  ;;  %v3906_v19 = vpop.f32.mrb[54].mxu0  ;;  %v3179_v20 = vpop.f32.mrb[55].mxu1 }
 0x308   : > { %4034 = vst [vmem:[%s6746_s22 + $0x1a0] sm:$0xff] %v4495_v15  ;;  %v4497_v21 = vadd.f32 %v3906_v19, %v3177_v17  ;;  %v3908_v22 = vpop.f32.mrb[55].mxu0 }
 0x309   : > { %4035 = vst.msk [vmem:[%s6746_s22 + $0x1a8] sm:$0xff] %vm3982_vm1, %v4496_v18  ;;  %v4498_v23 = vadd.f32 %v3908_v22, %v3179_v20 }
 0x30a   : > { %4036 = vst [vmem:[%s6746_s22 + $0x1b0] sm:$0xff] %v4497_v21 }
 0x30b   : > { %4037 = vst.msk [vmem:[%s6746_s22 + $0x1b8] sm:$0xff] %vm3982_vm1, %v4498_v23 }
 0x30c   : > { %v3183_v24 = vpop.f32.mrb[56].mxu1 }
 0x30d   : > { %v3912_v25 = vpop.f32.mrb[56].mxu0  ;;  %v3185_v26 = vpop.f32.mrb[57].mxu1 }
 0x30e   : > { %v4499_v27 = vadd.f32 %v3912_v25, %v3183_v24  ;;  %v3914_v28 = vpop.f32.mrb[57].mxu0  ;;  %v3187_v29 = vpop.f32.mrb[58].mxu1 }
 0x30f   : > { %v4500_v30 = vadd.f32 %v3914_v28, %v3185_v26  ;;  %v3916_v31 = vpop.f32.mrb[58].mxu0  ;;  %v3189_v32 = vpop.f32.mrb[59].mxu1 }
 0x310   : > { %4038 = vst [vmem:[%s6746_s22 + $0x1c0] sm:$0xff] %v4499_v27  ;;  %v4501_v33 = vadd.f32 %v3916_v31, %v3187_v29  ;;  %v3918_v34 = vpop.f32.mrb[59].mxu0 }
 0x311   : > { %4039 = vst.msk [vmem:[%s6746_s22 + $0x1c8] sm:$0xff] %vm3982_vm1, %v4500_v30  ;;  %v4502_v35 = vadd.f32 %v3918_v34, %v3189_v32 }
 0x312   : > { %4040 = vst [vmem:[%s6746_s22 + $0x1d0] sm:$0xff] %v4501_v33 }
 0x313   : > { %4041 = vst.msk [vmem:[%s6746_s22 + $0x1d8] sm:$0xff] %vm3982_vm1, %v4502_v35 }
 0x314   : > { %v3193_v36 = vpop.f32.mrb[60].mxu1 }
 0x315   : > { %v3922_v37 = vpop.f32.mrb[60].mxu0  ;;  %v3195_v38 = vpop.f32.mrb[61].mxu1 }
 0x316   : > { %v4503_v39 = vadd.f32 %v3922_v37, %v3193_v36  ;;  %v3924_v40 = vpop.f32.mrb[61].mxu0  ;;  %v3197_v41 = vpop.f32.mrb[62].mxu1 }
 0x317   : > { %v4504_v42 = vadd.f32 %v3924_v40, %v3195_v38  ;;  %v3926_v43 = vpop.f32.mrb[62].mxu0  ;;  %v3199_v44 = vpop.f32.mrb[63].mxu1 }
 0x318   : > { %4042 = vst [vmem:[%s6746_s22 + $0x1e0] sm:$0xff] %v4503_v39  ;;  %v4505_v45 = vadd.f32 %v3926_v43, %v3197_v41  ;;  %v3928_v46 = vpop.f32.mrb[63].mxu0 }
 0x319   : > { %4043 = vst.msk [vmem:[%s6746_s22 + $0x1e8] sm:$0xff] %vm3982_vm1, %v4504_v42  ;;  %v4506_v47 = vadd.f32 %v3928_v46, %v3199_v44 }
 0x31a   : > { %4044 = vst [vmem:[%s6746_s22 + $0x1f0] sm:$0xff] %v4505_v45 }
 0x31b   : > { %4045 = vst.msk [vmem:[%s6746_s22 + $0x1f8] sm:$0xff] %vm3982_vm1, %v4506_v47 }
 0x31c   : > { %v3203_v48 = vpop.f32.mrb[64].mxu1 }
 0x31d   : > { %v3932_v49 = vpop.f32.mrb[64].mxu0  ;;  %v3205_v50 = vpop.f32.mrb[65].mxu1 }
 0x31e   : > { %v4507_v51 = vadd.f32 %v3932_v49, %v3203_v48  ;;  %v3934_v52 = vpop.f32.mrb[65].mxu0  ;;  %v3207_v53 = vpop.f32.mrb[66].mxu1 }
 0x31f   : > { %v4508_v54 = vadd.f32 %v3934_v52, %v3205_v50  ;;  %v3936_v55 = vpop.f32.mrb[66].mxu0  ;;  %v3209_v56 = vpop.f32.mrb[67].mxu1 }
 0x320   : > { %4046 = vst [vmem:[%s6746_s22 + $0x200] sm:$0xff] %v4507_v51  ;;  %v4509_v57 = vadd.f32 %v3936_v55, %v3207_v53  ;;  %v3938_v58 = vpop.f32.mrb[67].mxu0 }
 0x321   : > { %4047 = vst.msk [vmem:[%s6746_s22 + $0x208] sm:$0xff] %vm3982_vm1, %v4508_v54  ;;  %v4510_v59 = vadd.f32 %v3938_v58, %v3209_v56 }
 0x322   : > { %4048 = vst [vmem:[%s6746_s22 + $0x210] sm:$0xff] %v4509_v57 }
 0x323   : > { %4049 = vst.msk [vmem:[%s6746_s22 + $0x218] sm:$0xff] %vm3982_vm1, %v4510_v59 }
 0x324   : > { %v3213_v60 = vpop.f32.mrb[68].mxu1 }
 0x325   : > { %v3942_v61 = vpop.f32.mrb[68].mxu0  ;;  %v3215_v62 = vpop.f32.mrb[69].mxu1 }
 0x326   : > { %v4511_v63 = vadd.f32 %v3942_v61, %v3213_v60  ;;  %v3944_v0 = vpop.f32.mrb[69].mxu0  ;;  %v3217_v1 = vpop.f32.mrb[70].mxu1 }
 0x327   : > { %v4512_v2 = vadd.f32 %v3944_v0, %v3215_v62  ;;  %v3946_v3 = vpop.f32.mrb[70].mxu0  ;;  %v3219_v4 = vpop.f32.mrb[71].mxu1 }
 0x328   : > { %4050 = vst [vmem:[%s6746_s22 + $0x220] sm:$0xff] %v4511_v63  ;;  %v4513_v5 = vadd.f32 %v3946_v3, %v3217_v1  ;;  %v3948_v6 = vpop.f32.mrb[71].mxu0 }
 0x329   : > { %4051 = vst.msk [vmem:[%s6746_s22 + $0x228] sm:$0xff] %vm3982_vm1, %v4512_v2  ;;  %v4514_v7 = vadd.f32 %v3948_v6, %v3219_v4 }
 0x32a   : > { %4052 = vst [vmem:[%s6746_s22 + $0x230] sm:$0xff] %v4513_v5 }
 0x32b   : > { %4053 = vst.msk [vmem:[%s6746_s22 + $0x238] sm:$0xff] %vm3982_vm1, %v4514_v7 }
 0x32c   : > { %v3223_v8 = vpop.f32.mrb[72].mxu1 }
 0x32d   : > { %v3952_v9 = vpop.f32.mrb[72].mxu0  ;;  %v3225_v10 = vpop.f32.mrb[73].mxu1 }
 0x32e   : > { %v4515_v11 = vadd.f32 %v3952_v9, %v3223_v8  ;;  %v3954_v12 = vpop.f32.mrb[73].mxu0  ;;  %v3227_v13 = vpop.f32.mrb[74].mxu1 }
 0x32f   : > { %v4516_v14 = vadd.f32 %v3954_v12, %v3225_v10  ;;  %v3956_v15 = vpop.f32.mrb[74].mxu0  ;;  %v3229_v16 = vpop.f32.mrb[75].mxu1 }
 0x330   : > { %4054 = vst [vmem:[%s6746_s22 + $0x240] sm:$0xff] %v4515_v11  ;;  %v4517_v17 = vadd.f32 %v3956_v15, %v3227_v13  ;;  %v3958_v18 = vpop.f32.mrb[75].mxu0 }
 0x331   : > { %4055 = vst.msk [vmem:[%s6746_s22 + $0x248] sm:$0xff] %vm3982_vm1, %v4516_v14  ;;  %v4518_v19 = vadd.f32 %v3958_v18, %v3229_v16 }
 0x332   : > { %4056 = vst [vmem:[%s6746_s22 + $0x250] sm:$0xff] %v4517_v17 }
 0x333   : > { %4057 = vst.msk [vmem:[%s6746_s22 + $0x258] sm:$0xff] %vm3982_vm1, %v4518_v19 }
 0x334   : > { %v3233_v20 = vpop.f32.mrb[76].mxu1 }
 0x335   : > { %v3962_v21 = vpop.f32.mrb[76].mxu0  ;;  %v3235_v22 = vpop.f32.mrb[77].mxu1 }
 0x336   : > { %v4519_v23 = vadd.f32 %v3962_v21, %v3233_v20  ;;  %v3964_v24 = vpop.f32.mrb[77].mxu0  ;;  %v3237_v25 = vpop.f32.mrb[78].mxu1 }
 0x337   : > { %v4520_v26 = vadd.f32 %v3964_v24, %v3235_v22  ;;  %v3966_v27 = vpop.f32.mrb[78].mxu0  ;;  %v3239_v28 = vpop.f32.mrb[79].mxu1 }
 0x338   : > { %4058 = vst [vmem:[%s6746_s22 + $0x260] sm:$0xff] %v4519_v23  ;;  %v4521_v29 = vadd.f32 %v3966_v27, %v3237_v25  ;;  %v3968_v30 = vpop.f32.mrb[79].mxu0 }
 0x339   : > { %4059 = vst.msk [vmem:[%s6746_s22 + $0x268] sm:$0xff] %vm3982_vm1, %v4520_v26  ;;  %v4522_v31 = vadd.f32 %v3968_v30, %v3239_v28 }
 0x33a   : > { %4060 = vst [vmem:[%s6746_s22 + $0x270] sm:$0xff] %v4521_v29 }
 0x33b   : > { %4061 = vst.msk [vmem:[%s6746_s22 + $0x278] sm:$0xff] %vm3982_vm1, %v4522_v31 }
 0x33c   : > { %v3243_v32 = vpop.f32.mrb[80].mxu1 }
 0x33d   : > { %v3972_v33 = vpop.f32.mrb[80].mxu0  ;;  %v3245_v34 = vpop.f32.mrb[81].mxu1 }
 0x33e   : > { %v4523_v35 = vadd.f32 %v3972_v33, %v3243_v32  ;;  %v3974_v36 = vpop.f32.mrb[81].mxu0  ;;  %v3247_v37 = vpop.f32.mrb[82].mxu1 }
 0x33f   : > { %v4524_v38 = vadd.f32 %v3974_v36, %v3245_v34  ;;  %v3976_v39 = vpop.f32.mrb[82].mxu0  ;;  %v3249_v40 = vpop.f32.mrb[83].mxu1 }
 0x340   : > { %4062 = vst [vmem:[%s6746_s22 + $0x280] sm:$0xff] %v4523_v35  ;;  %v4525_v41 = vadd.f32 %v3976_v39, %v3247_v37  ;;  %v3978_v42 = vpop.f32.mrb[83].mxu0 }
 0x341   : > { %4063 = vst.msk [vmem:[%s6746_s22 + $0x288] sm:$0xff] %vm3982_vm1, %v4524_v38  ;;  %v4526_v43 = vadd.f32 %v3978_v42, %v3249_v40 }
 0x342   : > { %4064 = vst [vmem:[%s6746_s22 + $0x290] sm:$0xff] %v4525_v41 }
 0x343   : > { %4065 = vst.msk [vmem:[%s6746_s22 + $0x298] sm:$0xff] %vm3982_vm1, %v4526_v43 }
 0x344 PF: > { %s15_s14 = sadd.s32 1, %s5341_s14   ;;  %s6898_s9 = smov %s5325_s10 }
 0x345   : > { %p12_p9 = scmp.ge.s32.totalorder %s15_s14, 6   ;;  %s6899_s10 = smov %s5329_s11 }
 0x346   : > { %s6900_s11 = smov %s5407_s20  ;;  %s6901_s12 = smov %s5337_s13 }
 0x347   : > { %s6902_s13 = smov %s6904_s16  ;;  %14 = sbr.rel (!%p12_p9) target bundleno = 4 (0x4), region = 71 }
 0x34e   :  { %4098 = vsyncpa [#allocation3], 1 }
 0x34f   :  { %4100 = vsyncpa [#allocation3 + $0x1], 1 }

</bundles_post_ra>
